<compile_context>
chip_gen: v7x
topology: tpu7x:2x2x1
jax: 0.10.0
libtpu: 0.0.40
codegen_flags: <defaults>
</compile_context>

<pallas_src>
import jax
import jax.numpy as jnp
from jax.experimental import pallas as pl
from jax.experimental.pallas import tpu as pltpu

VMEM_SPEC = pl.BlockSpec(memory_space=pltpu.MemorySpace.VMEM)


# ----------------------------- fused forward kernel -----------------------------
def _make_fused_kernel(num_layers, T, Bp, H):
    """Build the fused DenseLSTM forward kernel (single pallas_call, no grid)."""

    def kernel(*refs):
        x_ref = refs[0]                              # (T*Bp, feat_pad) bf16 -- fc_bert folded in
        lstm_refs = refs[1:1 + 3 * num_layers]       # per layer: wih bf16, whh bf16, b f32 (1,4H)
        wfc_ref = refs[1 + 3 * num_layers]           # (H, out_pad) bf16
        bfc_ref = refs[2 + 3 * num_layers]           # (1, out_pad) f32
        out_ref = refs[3 + 3 * num_layers]           # (Bp, out_pad) f32

        def lstm_step(xg, h, c, whh):
            # xg already holds x_t @ W_ih + b (f32); only h @ W_hh sits on the serial chain.
            gates = xg + jnp.dot(h.astype(jnp.bfloat16), whh,
                                 preferred_element_type=jnp.float32)       # (Bp, 4H) f32
            # Single EUP pass over the full 128-lane gate block.  The g-gate columns were
            # pre-scaled by 2 offline, so 2*sigmoid(.)-1 reproduces tanh exactly.
            s = jax.nn.sigmoid(gates)
            i = s[:, 0:H]
            f = s[:, H:2 * H]
            g = 2.0 * s[:, 2 * H:3 * H] - 1.0
            o = s[:, 3 * H:4 * H]
            c = f * c + i * g
            h = o * jnp.tanh(c)
            return h, c

        # ---- layer 0: non-recurrent input projection hoisted to one big MXU matmul ----
        wih0 = lstm_refs[0][...]
        whh0 = lstm_refs[1][...]
        b0 = lstm_refs[2][...]
        xproj0 = jnp.dot(x_ref[...], wih0, preferred_element_type=jnp.float32) + b0  # (T*Bp, 4H)

        h = jnp.zeros((Bp, H), jnp.float32)          # reset_cell(): zero h0 / c0 every forward
        c = jnp.zeros((Bp, H), jnp.float32)
        hs = []
        for t in range(T):                           # fully unrolled: full scheduler visibility
            h, c = lstm_step(xproj0[t * Bp:(t + 1) * Bp, :], h, c, whh0)
            hs.append(h)

        # ---- layers 1..L-1: per-step input projection so layer l+1 step t depends only on
        # layer l step t (wavefront); h values stay in vregs -> no VMEM round-trip. ----
        for l in range(1, num_layers):
            wih = lstm_refs[3 * l][...]
            whh = lstm_refs[3 * l + 1][...]
            b = lstm_refs[3 * l + 2][...]
            h = jnp.zeros((Bp, H), jnp.float32)
            c = jnp.zeros((Bp, H), jnp.float32)
            new_hs = []
            for t in range(T):
                xg = jnp.dot(hs[t].astype(jnp.bfloat16), wih,
                             preferred_element_type=jnp.float32) + b
                h, c = lstm_step(xg, h, c, whh)
                new_hs.append(h)
            hs = new_hs
        # TODO(synk): nn.LSTM inter-layer dropout is training-only; eval semantics used here.

        # ---- final fc fused on the last timestep (lane-dense 128-wide output) ----
        out_ref[...] = jnp.dot(h.astype(jnp.bfloat16), wfc_ref[...],
                               preferred_element_type=jnp.float32) + bfc_ref[...]

    return kernel


# ----------------------------- offline weight prep -----------------------------
def fold_params(params, input_dim, BERT_size, out_pad=128):
    """Offline weight prep (once per weight set):
      * fold slice -> fc_bert -> concat into layer-0's LSTM input weights (concat->matmul is affine):
            lstm_in @ wih0 = non_bert @ wih0_top + bert @ (Wb @ wih0_bot) + bb @ wih0_bot
      * scale the g-gate columns (2H:3H) by 2 so the kernel can use 2*sigmoid-1 instead of tanh,
      * pad the folded contraction dim to a sublane multiple and the fc output to 128 lanes,
      * cast matmul weights to bf16 (biases stay f32; accumulation is f32 in-kernel).
    """
    wb, bb = params["w_bert"], params["b_bert"]          # (BERT, dense_out), (1, dense_out)
    wih0, whh0, b0 = params["lstm"][0]
    feat = input_dim + BERT_size
    four_h = wih0.shape[1]
    H = four_h // 4

    # ---- fold fc_bert into layer-0 W_ih (module: bert slice overlaps non_bert slice) ----
    wih0_top = wih0[:input_dim]                          # acts on non_bert columns
    wih0_bot = wih0[input_dim:]                          # acts on bert_new columns
    w_eff = jnp.zeros((feat, four_h), jnp.float32)
    w_eff = w_eff.at[:input_dim].set(wih0_top)
    w_eff = w_eff.at[:BERT_size].add(wb @ wih0_bot)      # bert = FIRST BERT_size columns (as in module)
    b_eff = b0 + bb @ wih0_bot                           # (1, 4H)

    layers = [(w_eff, whh0, b_eff)] + [tuple(l) for l in params["lstm"][1:]]

    # ---- g-gate 2x fold: tanh(x) == 2*sigmoid(2x) - 1 ----
    gscale = jnp.ones((1, four_h), jnp.float32).at[:, 2 * H:3 * H].set(2.0)
    layers = [(wih * gscale, whh * gscale, b * gscale) for (wih, whh, b) in layers]

    # ---- layout padding + bf16 weight cast ----
    feat_pad = -(-feat // 8) * 8                         # 10 -> 16: un-ragged K for the hoisted xproj
    fused = []
    for li, (wih, whh, b) in enumerate(layers):
        if li == 0:
            wih = jnp.pad(wih, ((0, feat_pad - feat), (0, 0)))
        fused.append((wih.astype(jnp.bfloat16), whh.astype(jnp.bfloat16), b))

    out_dim = params["w_fc"].shape[1]
    w_fc = jnp.pad(params["w_fc"], ((0, 0), (0, out_pad - out_dim))).astype(jnp.bfloat16)
    b_fc = jnp.pad(params["b_fc"], ((0, 0), (0, out_pad - out_dim)))
    return {"lstm": fused, "w_fc": w_fc, "b_fc": b_fc}


# ----------------------------- wrapper (one pallas_call) -----------------------------
def dense_lstm_forward(fused_params, x, *, out_dim):
    # x: (B, T, input_dim + BERT_size), batch-first like the PyTorch module.
    B, T, feat = x.shape
    H = fused_params["lstm"][0][1].shape[0]
    feat_pad = fused_params["lstm"][0][0].shape[0]
    out_pad = fused_params["w_fc"].shape[1]
    num_layers = len(fused_params["lstm"])

    # Pad batch to a sublane multiple (>=8) so every matmul feeds full vreg rows;
    # pad features to the padded folded K (zeros contribute nothing).
    Bp = max(8, -(-B // 8) * 8)
    x_tm = jnp.transpose(x, (1, 0, 2))                       # (T, B, feat) time-major
    x_tm = jnp.pad(x_tm, ((0, 0), (0, Bp - B), (0, feat_pad - feat)))
    x_flat = x_tm.reshape(T * Bp, feat_pad).astype(jnp.bfloat16)   # row t*Bp + b <-> (t, b)

    kernel = _make_fused_kernel(num_layers, T, Bp, H)

    inputs = [x_flat]
    for (wih, whh, b) in fused_params["lstm"]:
        inputs += [wih, whh, b]
    inputs += [fused_params["w_fc"], fused_params["b_fc"]]

    out = pl.pallas_call(
        kernel,
        out_shape=jax.ShapeDtypeStruct((Bp, out_pad), jnp.float32),
        in_specs=[VMEM_SPEC] * len(inputs),
        out_specs=VMEM_SPEC,
    )(*inputs)
    return out[:B, :out_dim]


# ----------------------------- parameter init (mirrors PyTorch defaults) -----------------------------
def init_params(key, input_dim, hidden_dim, num_layers, output_dim, BERT_size, dense_out):
    lstm_input_dim = input_dim + dense_out
    keys = iter(jax.random.split(key, 4 + 4 * num_layers))

    def u(k, shape, fan):
        bound = 1.0 / jnp.sqrt(jnp.float32(fan))
        return jax.random.uniform(k, shape, jnp.float32, -bound, bound)

    params = {
        # fc_bert: Linear(BERT_size -> dense_out), stored transposed for right-multiplication.
        "w_bert": u(next(keys), (BERT_size, dense_out), BERT_size),
        "b_bert": u(next(keys), (1, dense_out), BERT_size),
        # fc: Linear(hidden_dim -> output_dim)
        "w_fc": u(next(keys), (hidden_dim, output_dim), hidden_dim),
        "b_fc": u(next(keys), (1, output_dim), hidden_dim),
        "lstm": [],
    }
    for layer in range(num_layers):
        in_l = lstm_input_dim if layer == 0 else hidden_dim
        wih = u(next(keys), (in_l, 4 * hidden_dim), hidden_dim)        # = weight_ih_l{l}.T
        whh = u(next(keys), (hidden_dim, 4 * hidden_dim), hidden_dim)  # = weight_hh_l{l}.T
        b_ih = u(next(keys), (1, 4 * hidden_dim), hidden_dim)
        b_hh = u(next(keys), (1, 4 * hidden_dim), hidden_dim)
        params["lstm"].append((wih, whh, b_ih + b_hh))
    return params


# ----------------------------- pure-JAX reference (literal module semantics, f32) -----------------------------
def reference_forward(params, x, BERT_size):
    B, T, _ = x.shape
    H = params["lstm"][0][1].shape[0]
    bert = x[:, :, :BERT_size]
    non_bert = x[:, :, :-BERT_size]
    bert_new = bert @ params["w_bert"] + params["b_bert"]
    layer_in = jnp.concatenate([non_bert, bert_new], axis=2)
    for (wih, whh, b) in params["lstm"]:
        h = jnp.zeros((B, H), jnp.float32)
        c = jnp.zeros((B, H), jnp.float32)
        outs = []
        for t in range(T):
            gates = layer_in[:, t, :] @ wih + h @ whh + b
            i = jax.nn.sigmoid(gates[:, :H])
            f = jax.nn.sigmoid(gates[:, H:2 * H])
            g = jnp.tanh(gates[:, 2 * H:3 * H])
            o = jax.nn.sigmoid(gates[:, 3 * H:])
            c = f * c + i * g
            h = o * jnp.tanh(c)
            outs.append(h)
        layer_in = jnp.stack(outs, axis=1)
    return layer_in[:, -1, :] @ params["w_fc"] + params["b_fc"]


# ----------------------------- main -----------------------------
if __name__ == "__main__":
    input_dim = 6
    BERT_size = 4
    hidden_dim = 32
    num_layers = 2
    output_dim = 3
    dense_out = 10
    batch = 2
    seq = 8
    feat = input_dim + BERT_size  # = self.input_dim in the module

    key = jax.random.PRNGKey(0)
    pkey, xkey = jax.random.split(key)
    params = init_params(pkey, input_dim, hidden_dim, num_layers, output_dim,
                         BERT_size, dense_out)
    x = jax.random.normal(xkey, (batch, seq, feat), jnp.float32)

    fused = fold_params(params, input_dim, BERT_size)        # offline, once per weight set
    fwd = jax.jit(dense_lstm_forward, static_argnames=("out_dim",))
    out = jax.block_until_ready(fwd(fused, x, out_dim=output_dim))
    assert out.shape == (batch, output_dim)

    # Validate fused kernel against the literal (un-folded, multi-op) f32 module math.
    # Tolerance relaxed vs the previous f32-operand version: bf16 MXU operands compound
    # over num_layers*T = 16 recurrent steps (gate/elementwise math itself stays f32).
    ref = reference_forward(params, x, BERT_size)
    max_err = float(jnp.max(jnp.abs(out - ref)))
    assert jnp.allclose(out, ref, atol=2e-2, rtol=2e-2), max_err

    print("KERNEL_OK")
</pallas_src>

<mosaic_0001>
module attributes {stable_mosaic.version = 11 : i64} {
  func.func @kernel(%arg0: memref<64x16xbf16, #tpu.memory_space<vmem>>, %arg1: memref<16x128xbf16, #tpu.memory_space<vmem>>, %arg2: memref<32x128xbf16, #tpu.memory_space<vmem>>, %arg3: memref<1x128xf32, #tpu.memory_space<vmem>>, %arg4: memref<32x128xbf16, #tpu.memory_space<vmem>>, %arg5: memref<32x128xbf16, #tpu.memory_space<vmem>>, %arg6: memref<1x128xf32, #tpu.memory_space<vmem>>, %arg7: memref<32x128xbf16, #tpu.memory_space<vmem>>, %arg8: memref<1x128xf32, #tpu.memory_space<vmem>>, %arg9: memref<8x128xf32, #tpu.memory_space<vmem>>) attributes {dimension_semantics = [], scalar_prefetch = 0 : i64, scratch_operands = 0 : i64, tpu.core_type = #tpu.core_type<tc>} {
    %c0 = arith.constant 0 : index
    %c0_0 = arith.constant 0 : index
    %0 = vector.load %arg1[%c0, %c0_0] : memref<16x128xbf16, #tpu.memory_space<vmem>>, vector<16x128xbf16>
    %c0_1 = arith.constant 0 : index
    %c0_2 = arith.constant 0 : index
    %1 = vector.load %arg2[%c0_1, %c0_2] : memref<32x128xbf16, #tpu.memory_space<vmem>>, vector<32x128xbf16>
    %c0_3 = arith.constant 0 : index
    %c0_4 = arith.constant 0 : index
    %2 = vector.load %arg3[%c0_3, %c0_4] : memref<1x128xf32, #tpu.memory_space<vmem>>, vector<1x128xf32>
    %c0_5 = arith.constant 0 : index
    %c0_6 = arith.constant 0 : index
    %3 = vector.load %arg0[%c0_5, %c0_6] : memref<64x16xbf16, #tpu.memory_space<vmem>>, vector<64x16xbf16>
    %cst = arith.constant dense<0.000000e+00> : vector<64x128xf32>
    %4 = tpu.matmul %3, %0, %cst {dimension_numbers = #tpu.dot_dimension_numbers<[1], [0], [0], [1], [0, 0, 1, 1], [], []>} : vector<64x16xbf16>, vector<16x128xbf16>, vector<64x128xf32> -> vector<64x128xf32>
    %5 = vector.broadcast %2 : vector<1x128xf32> to vector<64x128xf32>
    %6 = arith.addf %4, %5 : vector<64x128xf32>
    %cst_7 = arith.constant 0.000000e+00 : f32
    %7 = vector.broadcast %cst_7 : f32 to vector<8x32xf32>
    %cst_8 = arith.constant 0.000000e+00 : f32
    %8 = vector.broadcast %cst_8 : f32 to vector<8x32xf32>
    %9 = vector.extract_strided_slice %6 {offsets = [0, 0], sizes = [8, 128], strides = [1, 1]} : vector<64x128xf32> to vector<8x128xf32>
    %10 = arith.truncf %7 : vector<8x32xf32> to vector<8x32xbf16>
    %cst_9 = arith.constant dense<0.000000e+00> : vector<8x128xf32>
    %11 = tpu.matmul %10, %1, %cst_9 {dimension_numbers = #tpu.dot_dimension_numbers<[1], [0], [0], [1], [0, 0, 1, 1], [], []>} : vector<8x32xbf16>, vector<32x128xbf16>, vector<8x128xf32> -> vector<8x128xf32>
    %12 = arith.addf %9, %11 : vector<8x128xf32>
    %13 = arith.negf %12 : vector<8x128xf32>
    %14 = math.exp %13 : vector<8x128xf32>
    %cst_10 = arith.constant 1.000000e+00 : f32
    %15 = vector.broadcast %cst_10 : f32 to vector<8x128xf32>
    %16 = arith.addf %15, %14 : vector<8x128xf32>
    %17 = arith.divf %15, %16 : vector<8x128xf32>
    %18 = vector.extract_strided_slice %17 {offsets = [0, 0], sizes = [8, 32], strides = [1, 1]} : vector<8x128xf32> to vector<8x32xf32>
    %19 = vector.extract_strided_slice %17 {offsets = [0, 32], sizes = [8, 32], strides = [1, 1]} : vector<8x128xf32> to vector<8x32xf32>
    %20 = vector.extract_strided_slice %17 {offsets = [0, 64], sizes = [8, 32], strides = [1, 1]} : vector<8x128xf32> to vector<8x32xf32>
    %cst_11 = arith.constant 2.000000e+00 : f32
    %21 = vector.broadcast %cst_11 : f32 to vector<8x32xf32>
    %22 = arith.mulf %21, %20 : vector<8x32xf32>
    %cst_12 = arith.constant 1.000000e+00 : f32
    %23 = vector.broadcast %cst_12 : f32 to vector<8x32xf32>
    %24 = arith.subf %22, %23 : vector<8x32xf32>
    %25 = vector.extract_strided_slice %17 {offsets = [0, 96], sizes = [8, 32], strides = [1, 1]} : vector<8x128xf32> to vector<8x32xf32>
    %26 = arith.mulf %19, %8 : vector<8x32xf32>
    %27 = arith.mulf %18, %24 : vector<8x32xf32>
    %28 = arith.addf %26, %27 : vector<8x32xf32>
    %29 = math.tanh %28 : vector<8x32xf32>
    %30 = arith.mulf %25, %29 : vector<8x32xf32>
    %31 = vector.extract_strided_slice %6 {offsets = [8, 0], sizes = [8, 128], strides = [1, 1]} : vector<64x128xf32> to vector<8x128xf32>
    %32 = arith.truncf %30 : vector<8x32xf32> to vector<8x32xbf16>
    %cst_13 = arith.constant dense<0.000000e+00> : vector<8x128xf32>
    %33 = tpu.matmul %32, %1, %cst_13 {dimension_numbers = #tpu.dot_dimension_numbers<[1], [0], [0], [1], [0, 0, 1, 1], [], []>} : vector<8x32xbf16>, vector<32x128xbf16>, vector<8x128xf32> -> vector<8x128xf32>
    %34 = arith.addf %31, %33 : vector<8x128xf32>
    %35 = arith.negf %34 : vector<8x128xf32>
    %36 = math.exp %35 : vector<8x128xf32>
    %cst_14 = arith.constant 1.000000e+00 : f32
    %37 = vector.broadcast %cst_14 : f32 to vector<8x128xf32>
    %38 = arith.addf %37, %36 : vector<8x128xf32>
    %39 = arith.divf %37, %38 : vector<8x128xf32>
    %40 = vector.extract_strided_slice %39 {offsets = [0, 0], sizes = [8, 32], strides = [1, 1]} : vector<8x128xf32> to vector<8x32xf32>
    %41 = vector.extract_strided_slice %39 {offsets = [0, 32], sizes = [8, 32], strides = [1, 1]} : vector<8x128xf32> to vector<8x32xf32>
    %42 = vector.extract_strided_slice %39 {offsets = [0, 64], sizes = [8, 32], strides = [1, 1]} : vector<8x128xf32> to vector<8x32xf32>
    %cst_15 = arith.constant 2.000000e+00 : f32
    %43 = vector.broadcast %cst_15 : f32 to vector<8x32xf32>
    %44 = arith.mulf %43, %42 : vector<8x32xf32>
    %cst_16 = arith.constant 1.000000e+00 : f32
    %45 = vector.broadcast %cst_16 : f32 to vector<8x32xf32>
    %46 = arith.subf %44, %45 : vector<8x32xf32>
    %47 = vector.extract_strided_slice %39 {offsets = [0, 96], sizes = [8, 32], strides = [1, 1]} : vector<8x128xf32> to vector<8x32xf32>
    %48 = arith.mulf %41, %28 : vector<8x32xf32>
    %49 = arith.mulf %40, %46 : vector<8x32xf32>
    %50 = arith.addf %48, %49 : vector<8x32xf32>
    %51 = math.tanh %50 : vector<8x32xf32>
    %52 = arith.mulf %47, %51 : vector<8x32xf32>
    %53 = vector.extract_strided_slice %6 {offsets = [16, 0], sizes = [8, 128], strides = [1, 1]} : vector<64x128xf32> to vector<8x128xf32>
    %54 = arith.truncf %52 : vector<8x32xf32> to vector<8x32xbf16>
    %cst_17 = arith.constant dense<0.000000e+00> : vector<8x128xf32>
    %55 = tpu.matmul %54, %1, %cst_17 {dimension_numbers = #tpu.dot_dimension_numbers<[1], [0], [0], [1], [0, 0, 1, 1], [], []>} : vector<8x32xbf16>, vector<32x128xbf16>, vector<8x128xf32> -> vector<8x128xf32>
    %56 = arith.addf %53, %55 : vector<8x128xf32>
    %57 = arith.negf %56 : vector<8x128xf32>
    %58 = math.exp %57 : vector<8x128xf32>
    %cst_18 = arith.constant 1.000000e+00 : f32
    %59 = vector.broadcast %cst_18 : f32 to vector<8x128xf32>
    %60 = arith.addf %59, %58 : vector<8x128xf32>
    %61 = arith.divf %59, %60 : vector<8x128xf32>
    %62 = vector.extract_strided_slice %61 {offsets = [0, 0], sizes = [8, 32], strides = [1, 1]} : vector<8x128xf32> to vector<8x32xf32>
    %63 = vector.extract_strided_slice %61 {offsets = [0, 32], sizes = [8, 32], strides = [1, 1]} : vector<8x128xf32> to vector<8x32xf32>
    %64 = vector.extract_strided_slice %61 {offsets = [0, 64], sizes = [8, 32], strides = [1, 1]} : vector<8x128xf32> to vector<8x32xf32>
    %cst_19 = arith.constant 2.000000e+00 : f32
    %65 = vector.broadcast %cst_19 : f32 to vector<8x32xf32>
    %66 = arith.mulf %65, %64 : vector<8x32xf32>
    %cst_20 = arith.constant 1.000000e+00 : f32
    %67 = vector.broadcast %cst_20 : f32 to vector<8x32xf32>
    %68 = arith.subf %66, %67 : vector<8x32xf32>
    %69 = vector.extract_strided_slice %61 {offsets = [0, 96], sizes = [8, 32], strides = [1, 1]} : vector<8x128xf32> to vector<8x32xf32>
    %70 = arith.mulf %63, %50 : vector<8x32xf32>
    %71 = arith.mulf %62, %68 : vector<8x32xf32>
    %72 = arith.addf %70, %71 : vector<8x32xf32>
    %73 = math.tanh %72 : vector<8x32xf32>
    %74 = arith.mulf %69, %73 : vector<8x32xf32>
    %75 = vector.extract_strided_slice %6 {offsets = [24, 0], sizes = [8, 128], strides = [1, 1]} : vector<64x128xf32> to vector<8x128xf32>
    %76 = arith.truncf %74 : vector<8x32xf32> to vector<8x32xbf16>
    %cst_21 = arith.constant dense<0.000000e+00> : vector<8x128xf32>
    %77 = tpu.matmul %76, %1, %cst_21 {dimension_numbers = #tpu.dot_dimension_numbers<[1], [0], [0], [1], [0, 0, 1, 1], [], []>} : vector<8x32xbf16>, vector<32x128xbf16>, vector<8x128xf32> -> vector<8x128xf32>
    %78 = arith.addf %75, %77 : vector<8x128xf32>
    %79 = arith.negf %78 : vector<8x128xf32>
    %80 = math.exp %79 : vector<8x128xf32>
    %cst_22 = arith.constant 1.000000e+00 : f32
    %81 = vector.broadcast %cst_22 : f32 to vector<8x128xf32>
    %82 = arith.addf %81, %80 : vector<8x128xf32>
    %83 = arith.divf %81, %82 : vector<8x128xf32>
    %84 = vector.extract_strided_slice %83 {offsets = [0, 0], sizes = [8, 32], strides = [1, 1]} : vector<8x128xf32> to vector<8x32xf32>
    %85 = vector.extract_strided_slice %83 {offsets = [0, 32], sizes = [8, 32], strides = [1, 1]} : vector<8x128xf32> to vector<8x32xf32>
    %86 = vector.extract_strided_slice %83 {offsets = [0, 64], sizes = [8, 32], strides = [1, 1]} : vector<8x128xf32> to vector<8x32xf32>
    %cst_23 = arith.constant 2.000000e+00 : f32
    %87 = vector.broadcast %cst_23 : f32 to vector<8x32xf32>
    %88 = arith.mulf %87, %86 : vector<8x32xf32>
    %cst_24 = arith.constant 1.000000e+00 : f32
    %89 = vector.broadcast %cst_24 : f32 to vector<8x32xf32>
    %90 = arith.subf %88, %89 : vector<8x32xf32>
    %91 = vector.extract_strided_slice %83 {offsets = [0, 96], sizes = [8, 32], strides = [1, 1]} : vector<8x128xf32> to vector<8x32xf32>
    %92 = arith.mulf %85, %72 : vector<8x32xf32>
    %93 = arith.mulf %84, %90 : vector<8x32xf32>
    %94 = arith.addf %92, %93 : vector<8x32xf32>
    %95 = math.tanh %94 : vector<8x32xf32>
    %96 = arith.mulf %91, %95 : vector<8x32xf32>
    %97 = vector.extract_strided_slice %6 {offsets = [32, 0], sizes = [8, 128], strides = [1, 1]} : vector<64x128xf32> to vector<8x128xf32>
    %98 = arith.truncf %96 : vector<8x32xf32> to vector<8x32xbf16>
    %cst_25 = arith.constant dense<0.000000e+00> : vector<8x128xf32>
    %99 = tpu.matmul %98, %1, %cst_25 {dimension_numbers = #tpu.dot_dimension_numbers<[1], [0], [0], [1], [0, 0, 1, 1], [], []>} : vector<8x32xbf16>, vector<32x128xbf16>, vector<8x128xf32> -> vector<8x128xf32>
    %100 = arith.addf %97, %99 : vector<8x128xf32>
    %101 = arith.negf %100 : vector<8x128xf32>
    %102 = math.exp %101 : vector<8x128xf32>
    %cst_26 = arith.constant 1.000000e+00 : f32
    %103 = vector.broadcast %cst_26 : f32 to vector<8x128xf32>
    %104 = arith.addf %103, %102 : vector<8x128xf32>
    %105 = arith.divf %103, %104 : vector<8x128xf32>
    %106 = vector.extract_strided_slice %105 {offsets = [0, 0], sizes = [8, 32], strides = [1, 1]} : vector<8x128xf32> to vector<8x32xf32>
    %107 = vector.extract_strided_slice %105 {offsets = [0, 32], sizes = [8, 32], strides = [1, 1]} : vector<8x128xf32> to vector<8x32xf32>
    %108 = vector.extract_strided_slice %105 {offsets = [0, 64], sizes = [8, 32], strides = [1, 1]} : vector<8x128xf32> to vector<8x32xf32>
    %cst_27 = arith.constant 2.000000e+00 : f32
    %109 = vector.broadcast %cst_27 : f32 to vector<8x32xf32>
    %110 = arith.mulf %109, %108 : vector<8x32xf32>
    %cst_28 = arith.constant 1.000000e+00 : f32
    %111 = vector.broadcast %cst_28 : f32 to vector<8x32xf32>
    %112 = arith.subf %110, %111 : vector<8x32xf32>
    %113 = vector.extract_strided_slice %105 {offsets = [0, 96], sizes = [8, 32], strides = [1, 1]} : vector<8x128xf32> to vector<8x32xf32>
    %114 = arith.mulf %107, %94 : vector<8x32xf32>
    %115 = arith.mulf %106, %112 : vector<8x32xf32>
    %116 = arith.addf %114, %115 : vector<8x32xf32>
    %117 = math.tanh %116 : vector<8x32xf32>
    %118 = arith.mulf %113, %117 : vector<8x32xf32>
    %119 = vector.extract_strided_slice %6 {offsets = [40, 0], sizes = [8, 128], strides = [1, 1]} : vector<64x128xf32> to vector<8x128xf32>
    %120 = arith.truncf %118 : vector<8x32xf32> to vector<8x32xbf16>
    %cst_29 = arith.constant dense<0.000000e+00> : vector<8x128xf32>
    %121 = tpu.matmul %120, %1, %cst_29 {dimension_numbers = #tpu.dot_dimension_numbers<[1], [0], [0], [1], [0, 0, 1, 1], [], []>} : vector<8x32xbf16>, vector<32x128xbf16>, vector<8x128xf32> -> vector<8x128xf32>
    %122 = arith.addf %119, %121 : vector<8x128xf32>
    %123 = arith.negf %122 : vector<8x128xf32>
    %124 = math.exp %123 : vector<8x128xf32>
    %cst_30 = arith.constant 1.000000e+00 : f32
    %125 = vector.broadcast %cst_30 : f32 to vector<8x128xf32>
    %126 = arith.addf %125, %124 : vector<8x128xf32>
    %127 = arith.divf %125, %126 : vector<8x128xf32>
    %128 = vector.extract_strided_slice %127 {offsets = [0, 0], sizes = [8, 32], strides = [1, 1]} : vector<8x128xf32> to vector<8x32xf32>
    %129 = vector.extract_strided_slice %127 {offsets = [0, 32], sizes = [8, 32], strides = [1, 1]} : vector<8x128xf32> to vector<8x32xf32>
    %130 = vector.extract_strided_slice %127 {offsets = [0, 64], sizes = [8, 32], strides = [1, 1]} : vector<8x128xf32> to vector<8x32xf32>
    %cst_31 = arith.constant 2.000000e+00 : f32
    %131 = vector.broadcast %cst_31 : f32 to vector<8x32xf32>
    %132 = arith.mulf %131, %130 : vector<8x32xf32>
    %cst_32 = arith.constant 1.000000e+00 : f32
    %133 = vector.broadcast %cst_32 : f32 to vector<8x32xf32>
    %134 = arith.subf %132, %133 : vector<8x32xf32>
    %135 = vector.extract_strided_slice %127 {offsets = [0, 96], sizes = [8, 32], strides = [1, 1]} : vector<8x128xf32> to vector<8x32xf32>
    %136 = arith.mulf %129, %116 : vector<8x32xf32>
    %137 = arith.mulf %128, %134 : vector<8x32xf32>
    %138 = arith.addf %136, %137 : vector<8x32xf32>
    %139 = math.tanh %138 : vector<8x32xf32>
    %140 = arith.mulf %135, %139 : vector<8x32xf32>
    %141 = vector.extract_strided_slice %6 {offsets = [48, 0], sizes = [8, 128], strides = [1, 1]} : vector<64x128xf32> to vector<8x128xf32>
    %142 = arith.truncf %140 : vector<8x32xf32> to vector<8x32xbf16>
    %cst_33 = arith.constant dense<0.000000e+00> : vector<8x128xf32>
    %143 = tpu.matmul %142, %1, %cst_33 {dimension_numbers = #tpu.dot_dimension_numbers<[1], [0], [0], [1], [0, 0, 1, 1], [], []>} : vector<8x32xbf16>, vector<32x128xbf16>, vector<8x128xf32> -> vector<8x128xf32>
    %144 = arith.addf %141, %143 : vector<8x128xf32>
    %145 = arith.negf %144 : vector<8x128xf32>
    %146 = math.exp %145 : vector<8x128xf32>
    %cst_34 = arith.constant 1.000000e+00 : f32
    %147 = vector.broadcast %cst_34 : f32 to vector<8x128xf32>
    %148 = arith.addf %147, %146 : vector<8x128xf32>
    %149 = arith.divf %147, %148 : vector<8x128xf32>
    %150 = vector.extract_strided_slice %149 {offsets = [0, 0], sizes = [8, 32], strides = [1, 1]} : vector<8x128xf32> to vector<8x32xf32>
    %151 = vector.extract_strided_slice %149 {offsets = [0, 32], sizes = [8, 32], strides = [1, 1]} : vector<8x128xf32> to vector<8x32xf32>
    %152 = vector.extract_strided_slice %149 {offsets = [0, 64], sizes = [8, 32], strides = [1, 1]} : vector<8x128xf32> to vector<8x32xf32>
    %cst_35 = arith.constant 2.000000e+00 : f32
    %153 = vector.broadcast %cst_35 : f32 to vector<8x32xf32>
    %154 = arith.mulf %153, %152 : vector<8x32xf32>
    %cst_36 = arith.constant 1.000000e+00 : f32
    %155 = vector.broadcast %cst_36 : f32 to vector<8x32xf32>
    %156 = arith.subf %154, %155 : vector<8x32xf32>
    %157 = vector.extract_strided_slice %149 {offsets = [0, 96], sizes = [8, 32], strides = [1, 1]} : vector<8x128xf32> to vector<8x32xf32>
    %158 = arith.mulf %151, %138 : vector<8x32xf32>
    %159 = arith.mulf %150, %156 : vector<8x32xf32>
    %160 = arith.addf %158, %159 : vector<8x32xf32>
    %161 = math.tanh %160 : vector<8x32xf32>
    %162 = arith.mulf %157, %161 : vector<8x32xf32>
    %163 = vector.extract_strided_slice %6 {offsets = [56, 0], sizes = [8, 128], strides = [1, 1]} : vector<64x128xf32> to vector<8x128xf32>
    %164 = arith.truncf %162 : vector<8x32xf32> to vector<8x32xbf16>
    %cst_37 = arith.constant dense<0.000000e+00> : vector<8x128xf32>
    %165 = tpu.matmul %164, %1, %cst_37 {dimension_numbers = #tpu.dot_dimension_numbers<[1], [0], [0], [1], [0, 0, 1, 1], [], []>} : vector<8x32xbf16>, vector<32x128xbf16>, vector<8x128xf32> -> vector<8x128xf32>
    %166 = arith.addf %163, %165 : vector<8x128xf32>
    %167 = arith.negf %166 : vector<8x128xf32>
    %168 = math.exp %167 : vector<8x128xf32>
    %cst_38 = arith.constant 1.000000e+00 : f32
    %169 = vector.broadcast %cst_38 : f32 to vector<8x128xf32>
    %170 = arith.addf %169, %168 : vector<8x128xf32>
    %171 = arith.divf %169, %170 : vector<8x128xf32>
    %172 = vector.extract_strided_slice %171 {offsets = [0, 0], sizes = [8, 32], strides = [1, 1]} : vector<8x128xf32> to vector<8x32xf32>
    %173 = vector.extract_strided_slice %171 {offsets = [0, 32], sizes = [8, 32], strides = [1, 1]} : vector<8x128xf32> to vector<8x32xf32>
    %174 = vector.extract_strided_slice %171 {offsets = [0, 64], sizes = [8, 32], strides = [1, 1]} : vector<8x128xf32> to vector<8x32xf32>
    %cst_39 = arith.constant 2.000000e+00 : f32
    %175 = vector.broadcast %cst_39 : f32 to vector<8x32xf32>
    %176 = arith.mulf %175, %174 : vector<8x32xf32>
    %cst_40 = arith.constant 1.000000e+00 : f32
    %177 = vector.broadcast %cst_40 : f32 to vector<8x32xf32>
    %178 = arith.subf %176, %177 : vector<8x32xf32>
    %179 = vector.extract_strided_slice %171 {offsets = [0, 96], sizes = [8, 32], strides = [1, 1]} : vector<8x128xf32> to vector<8x32xf32>
    %180 = arith.mulf %173, %160 : vector<8x32xf32>
    %181 = arith.mulf %172, %178 : vector<8x32xf32>
    %182 = arith.addf %180, %181 : vector<8x32xf32>
    %183 = math.tanh %182 : vector<8x32xf32>
    %184 = arith.mulf %179, %183 : vector<8x32xf32>
    %c0_41 = arith.constant 0 : index
    %c0_42 = arith.constant 0 : index
    %185 = vector.load %arg4[%c0_41, %c0_42] : memref<32x128xbf16, #tpu.memory_space<vmem>>, vector<32x128xbf16>
    %c0_43 = arith.constant 0 : index
    %c0_44 = arith.constant 0 : index
    %186 = vector.load %arg5[%c0_43, %c0_44] : memref<32x128xbf16, #tpu.memory_space<vmem>>, vector<32x128xbf16>
    %c0_45 = arith.constant 0 : index
    %c0_46 = arith.constant 0 : index
    %187 = vector.load %arg6[%c0_45, %c0_46] : memref<1x128xf32, #tpu.memory_space<vmem>>, vector<1x128xf32>
    %cst_47 = arith.constant 0.000000e+00 : f32
    %188 = vector.broadcast %cst_47 : f32 to vector<8x32xf32>
    %cst_48 = arith.constant 0.000000e+00 : f32
    %189 = vector.broadcast %cst_48 : f32 to vector<8x32xf32>
    %190 = arith.truncf %30 : vector<8x32xf32> to vector<8x32xbf16>
    %cst_49 = arith.constant dense<0.000000e+00> : vector<8x128xf32>
    %191 = tpu.matmul %190, %185, %cst_49 {dimension_numbers = #tpu.dot_dimension_numbers<[1], [0], [0], [1], [0, 0, 1, 1], [], []>} : vector<8x32xbf16>, vector<32x128xbf16>, vector<8x128xf32> -> vector<8x128xf32>
    %192 = vector.broadcast %187 : vector<1x128xf32> to vector<8x128xf32>
    %193 = arith.addf %191, %192 : vector<8x128xf32>
    %194 = arith.truncf %188 : vector<8x32xf32> to vector<8x32xbf16>
    %cst_50 = arith.constant dense<0.000000e+00> : vector<8x128xf32>
    %195 = tpu.matmul %194, %186, %cst_50 {dimension_numbers = #tpu.dot_dimension_numbers<[1], [0], [0], [1], [0, 0, 1, 1], [], []>} : vector<8x32xbf16>, vector<32x128xbf16>, vector<8x128xf32> -> vector<8x128xf32>
    %196 = arith.addf %193, %195 : vector<8x128xf32>
    %197 = arith.negf %196 : vector<8x128xf32>
    %198 = math.exp %197 : vector<8x128xf32>
    %cst_51 = arith.constant 1.000000e+00 : f32
    %199 = vector.broadcast %cst_51 : f32 to vector<8x128xf32>
    %200 = arith.addf %199, %198 : vector<8x128xf32>
    %201 = arith.divf %199, %200 : vector<8x128xf32>
    %202 = vector.extract_strided_slice %201 {offsets = [0, 0], sizes = [8, 32], strides = [1, 1]} : vector<8x128xf32> to vector<8x32xf32>
    %203 = vector.extract_strided_slice %201 {offsets = [0, 32], sizes = [8, 32], strides = [1, 1]} : vector<8x128xf32> to vector<8x32xf32>
    %204 = vector.extract_strided_slice %201 {offsets = [0, 64], sizes = [8, 32], strides = [1, 1]} : vector<8x128xf32> to vector<8x32xf32>
    %cst_52 = arith.constant 2.000000e+00 : f32
    %205 = vector.broadcast %cst_52 : f32 to vector<8x32xf32>
    %206 = arith.mulf %205, %204 : vector<8x32xf32>
    %cst_53 = arith.constant 1.000000e+00 : f32
    %207 = vector.broadcast %cst_53 : f32 to vector<8x32xf32>
    %208 = arith.subf %206, %207 : vector<8x32xf32>
    %209 = vector.extract_strided_slice %201 {offsets = [0, 96], sizes = [8, 32], strides = [1, 1]} : vector<8x128xf32> to vector<8x32xf32>
    %210 = arith.mulf %203, %189 : vector<8x32xf32>
    %211 = arith.mulf %202, %208 : vector<8x32xf32>
    %212 = arith.addf %210, %211 : vector<8x32xf32>
    %213 = math.tanh %212 : vector<8x32xf32>
    %214 = arith.mulf %209, %213 : vector<8x32xf32>
    %215 = arith.truncf %52 : vector<8x32xf32> to vector<8x32xbf16>
    %cst_54 = arith.constant dense<0.000000e+00> : vector<8x128xf32>
    %216 = tpu.matmul %215, %185, %cst_54 {dimension_numbers = #tpu.dot_dimension_numbers<[1], [0], [0], [1], [0, 0, 1, 1], [], []>} : vector<8x32xbf16>, vector<32x128xbf16>, vector<8x128xf32> -> vector<8x128xf32>
    %217 = vector.broadcast %187 : vector<1x128xf32> to vector<8x128xf32>
    %218 = arith.addf %216, %217 : vector<8x128xf32>
    %219 = arith.truncf %214 : vector<8x32xf32> to vector<8x32xbf16>
    %cst_55 = arith.constant dense<0.000000e+00> : vector<8x128xf32>
    %220 = tpu.matmul %219, %186, %cst_55 {dimension_numbers = #tpu.dot_dimension_numbers<[1], [0], [0], [1], [0, 0, 1, 1], [], []>} : vector<8x32xbf16>, vector<32x128xbf16>, vector<8x128xf32> -> vector<8x128xf32>
    %221 = arith.addf %218, %220 : vector<8x128xf32>
    %222 = arith.negf %221 : vector<8x128xf32>
    %223 = math.exp %222 : vector<8x128xf32>
    %cst_56 = arith.constant 1.000000e+00 : f32
    %224 = vector.broadcast %cst_56 : f32 to vector<8x128xf32>
    %225 = arith.addf %224, %223 : vector<8x128xf32>
    %226 = arith.divf %224, %225 : vector<8x128xf32>
    %227 = vector.extract_strided_slice %226 {offsets = [0, 0], sizes = [8, 32], strides = [1, 1]} : vector<8x128xf32> to vector<8x32xf32>
    %228 = vector.extract_strided_slice %226 {offsets = [0, 32], sizes = [8, 32], strides = [1, 1]} : vector<8x128xf32> to vector<8x32xf32>
    %229 = vector.extract_strided_slice %226 {offsets = [0, 64], sizes = [8, 32], strides = [1, 1]} : vector<8x128xf32> to vector<8x32xf32>
    %cst_57 = arith.constant 2.000000e+00 : f32
    %230 = vector.broadcast %cst_57 : f32 to vector<8x32xf32>
    %231 = arith.mulf %230, %229 : vector<8x32xf32>
    %cst_58 = arith.constant 1.000000e+00 : f32
    %232 = vector.broadcast %cst_58 : f32 to vector<8x32xf32>
    %233 = arith.subf %231, %232 : vector<8x32xf32>
    %234 = vector.extract_strided_slice %226 {offsets = [0, 96], sizes = [8, 32], strides = [1, 1]} : vector<8x128xf32> to vector<8x32xf32>
    %235 = arith.mulf %228, %212 : vector<8x32xf32>
    %236 = arith.mulf %227, %233 : vector<8x32xf32>
    %237 = arith.addf %235, %236 : vector<8x32xf32>
    %238 = math.tanh %237 : vector<8x32xf32>
    %239 = arith.mulf %234, %238 : vector<8x32xf32>
    %240 = arith.truncf %74 : vector<8x32xf32> to vector<8x32xbf16>
    %cst_59 = arith.constant dense<0.000000e+00> : vector<8x128xf32>
    %241 = tpu.matmul %240, %185, %cst_59 {dimension_numbers = #tpu.dot_dimension_numbers<[1], [0], [0], [1], [0, 0, 1, 1], [], []>} : vector<8x32xbf16>, vector<32x128xbf16>, vector<8x128xf32> -> vector<8x128xf32>
    %242 = vector.broadcast %187 : vector<1x128xf32> to vector<8x128xf32>
    %243 = arith.addf %241, %242 : vector<8x128xf32>
    %244 = arith.truncf %239 : vector<8x32xf32> to vector<8x32xbf16>
    %cst_60 = arith.constant dense<0.000000e+00> : vector<8x128xf32>
    %245 = tpu.matmul %244, %186, %cst_60 {dimension_numbers = #tpu.dot_dimension_numbers<[1], [0], [0], [1], [0, 0, 1, 1], [], []>} : vector<8x32xbf16>, vector<32x128xbf16>, vector<8x128xf32> -> vector<8x128xf32>
    %246 = arith.addf %243, %245 : vector<8x128xf32>
    %247 = arith.negf %246 : vector<8x128xf32>
    %248 = math.exp %247 : vector<8x128xf32>
    %cst_61 = arith.constant 1.000000e+00 : f32
    %249 = vector.broadcast %cst_61 : f32 to vector<8x128xf32>
    %250 = arith.addf %249, %248 : vector<8x128xf32>
    %251 = arith.divf %249, %250 : vector<8x128xf32>
    %252 = vector.extract_strided_slice %251 {offsets = [0, 0], sizes = [8, 32], strides = [1, 1]} : vector<8x128xf32> to vector<8x32xf32>
    %253 = vector.extract_strided_slice %251 {offsets = [0, 32], sizes = [8, 32], strides = [1, 1]} : vector<8x128xf32> to vector<8x32xf32>
    %254 = vector.extract_strided_slice %251 {offsets = [0, 64], sizes = [8, 32], strides = [1, 1]} : vector<8x128xf32> to vector<8x32xf32>
    %cst_62 = arith.constant 2.000000e+00 : f32
    %255 = vector.broadcast %cst_62 : f32 to vector<8x32xf32>
    %256 = arith.mulf %255, %254 : vector<8x32xf32>
    %cst_63 = arith.constant 1.000000e+00 : f32
    %257 = vector.broadcast %cst_63 : f32 to vector<8x32xf32>
    %258 = arith.subf %256, %257 : vector<8x32xf32>
    %259 = vector.extract_strided_slice %251 {offsets = [0, 96], sizes = [8, 32], strides = [1, 1]} : vector<8x128xf32> to vector<8x32xf32>
    %260 = arith.mulf %253, %237 : vector<8x32xf32>
    %261 = arith.mulf %252, %258 : vector<8x32xf32>
    %262 = arith.addf %260, %261 : vector<8x32xf32>
    %263 = math.tanh %262 : vector<8x32xf32>
    %264 = arith.mulf %259, %263 : vector<8x32xf32>
    %265 = arith.truncf %96 : vector<8x32xf32> to vector<8x32xbf16>
    %cst_64 = arith.constant dense<0.000000e+00> : vector<8x128xf32>
    %266 = tpu.matmul %265, %185, %cst_64 {dimension_numbers = #tpu.dot_dimension_numbers<[1], [0], [0], [1], [0, 0, 1, 1], [], []>} : vector<8x32xbf16>, vector<32x128xbf16>, vector<8x128xf32> -> vector<8x128xf32>
    %267 = vector.broadcast %187 : vector<1x128xf32> to vector<8x128xf32>
    %268 = arith.addf %266, %267 : vector<8x128xf32>
    %269 = arith.truncf %264 : vector<8x32xf32> to vector<8x32xbf16>
    %cst_65 = arith.constant dense<0.000000e+00> : vector<8x128xf32>
    %270 = tpu.matmul %269, %186, %cst_65 {dimension_numbers = #tpu.dot_dimension_numbers<[1], [0], [0], [1], [0, 0, 1, 1], [], []>} : vector<8x32xbf16>, vector<32x128xbf16>, vector<8x128xf32> -> vector<8x128xf32>
    %271 = arith.addf %268, %270 : vector<8x128xf32>
    %272 = arith.negf %271 : vector<8x128xf32>
    %273 = math.exp %272 : vector<8x128xf32>
    %cst_66 = arith.constant 1.000000e+00 : f32
    %274 = vector.broadcast %cst_66 : f32 to vector<8x128xf32>
    %275 = arith.addf %274, %273 : vector<8x128xf32>
    %276 = arith.divf %274, %275 : vector<8x128xf32>
    %277 = vector.extract_strided_slice %276 {offsets = [0, 0], sizes = [8, 32], strides = [1, 1]} : vector<8x128xf32> to vector<8x32xf32>
    %278 = vector.extract_strided_slice %276 {offsets = [0, 32], sizes = [8, 32], strides = [1, 1]} : vector<8x128xf32> to vector<8x32xf32>
    %279 = vector.extract_strided_slice %276 {offsets = [0, 64], sizes = [8, 32], strides = [1, 1]} : vector<8x128xf32> to vector<8x32xf32>
    %cst_67 = arith.constant 2.000000e+00 : f32
    %280 = vector.broadcast %cst_67 : f32 to vector<8x32xf32>
    %281 = arith.mulf %280, %279 : vector<8x32xf32>
    %cst_68 = arith.constant 1.000000e+00 : f32
    %282 = vector.broadcast %cst_68 : f32 to vector<8x32xf32>
    %283 = arith.subf %281, %282 : vector<8x32xf32>
    %284 = vector.extract_strided_slice %276 {offsets = [0, 96], sizes = [8, 32], strides = [1, 1]} : vector<8x128xf32> to vector<8x32xf32>
    %285 = arith.mulf %278, %262 : vector<8x32xf32>
    %286 = arith.mulf %277, %283 : vector<8x32xf32>
    %287 = arith.addf %285, %286 : vector<8x32xf32>
    %288 = math.tanh %287 : vector<8x32xf32>
    %289 = arith.mulf %284, %288 : vector<8x32xf32>
    %290 = arith.truncf %118 : vector<8x32xf32> to vector<8x32xbf16>
    %cst_69 = arith.constant dense<0.000000e+00> : vector<8x128xf32>
    %291 = tpu.matmul %290, %185, %cst_69 {dimension_numbers = #tpu.dot_dimension_numbers<[1], [0], [0], [1], [0, 0, 1, 1], [], []>} : vector<8x32xbf16>, vector<32x128xbf16>, vector<8x128xf32> -> vector<8x128xf32>
    %292 = vector.broadcast %187 : vector<1x128xf32> to vector<8x128xf32>
    %293 = arith.addf %291, %292 : vector<8x128xf32>
    %294 = arith.truncf %289 : vector<8x32xf32> to vector<8x32xbf16>
    %cst_70 = arith.constant dense<0.000000e+00> : vector<8x128xf32>
    %295 = tpu.matmul %294, %186, %cst_70 {dimension_numbers = #tpu.dot_dimension_numbers<[1], [0], [0], [1], [0, 0, 1, 1], [], []>} : vector<8x32xbf16>, vector<32x128xbf16>, vector<8x128xf32> -> vector<8x128xf32>
    %296 = arith.addf %293, %295 : vector<8x128xf32>
    %297 = arith.negf %296 : vector<8x128xf32>
    %298 = math.exp %297 : vector<8x128xf32>
    %cst_71 = arith.constant 1.000000e+00 : f32
    %299 = vector.broadcast %cst_71 : f32 to vector<8x128xf32>
    %300 = arith.addf %299, %298 : vector<8x128xf32>
    %301 = arith.divf %299, %300 : vector<8x128xf32>
    %302 = vector.extract_strided_slice %301 {offsets = [0, 0], sizes = [8, 32], strides = [1, 1]} : vector<8x128xf32> to vector<8x32xf32>
    %303 = vector.extract_strided_slice %301 {offsets = [0, 32], sizes = [8, 32], strides = [1, 1]} : vector<8x128xf32> to vector<8x32xf32>
    %304 = vector.extract_strided_slice %301 {offsets = [0, 64], sizes = [8, 32], strides = [1, 1]} : vector<8x128xf32> to vector<8x32xf32>
    %cst_72 = arith.constant 2.000000e+00 : f32
    %305 = vector.broadcast %cst_72 : f32 to vector<8x32xf32>
    %306 = arith.mulf %305, %304 : vector<8x32xf32>
    %cst_73 = arith.constant 1.000000e+00 : f32
    %307 = vector.broadcast %cst_73 : f32 to vector<8x32xf32>
    %308 = arith.subf %306, %307 : vector<8x32xf32>
    %309 = vector.extract_strided_slice %301 {offsets = [0, 96], sizes = [8, 32], strides = [1, 1]} : vector<8x128xf32> to vector<8x32xf32>
    %310 = arith.mulf %303, %287 : vector<8x32xf32>
    %311 = arith.mulf %302, %308 : vector<8x32xf32>
    %312 = arith.addf %310, %311 : vector<8x32xf32>
    %313 = math.tanh %312 : vector<8x32xf32>
    %314 = arith.mulf %309, %313 : vector<8x32xf32>
    %315 = arith.truncf %140 : vector<8x32xf32> to vector<8x32xbf16>
    %cst_74 = arith.constant dense<0.000000e+00> : vector<8x128xf32>
    %316 = tpu.matmul %315, %185, %cst_74 {dimension_numbers = #tpu.dot_dimension_numbers<[1], [0], [0], [1], [0, 0, 1, 1], [], []>} : vector<8x32xbf16>, vector<32x128xbf16>, vector<8x128xf32> -> vector<8x128xf32>
    %317 = vector.broadcast %187 : vector<1x128xf32> to vector<8x128xf32>
    %318 = arith.addf %316, %317 : vector<8x128xf32>
    %319 = arith.truncf %314 : vector<8x32xf32> to vector<8x32xbf16>
    %cst_75 = arith.constant dense<0.000000e+00> : vector<8x128xf32>
    %320 = tpu.matmul %319, %186, %cst_75 {dimension_numbers = #tpu.dot_dimension_numbers<[1], [0], [0], [1], [0, 0, 1, 1], [], []>} : vector<8x32xbf16>, vector<32x128xbf16>, vector<8x128xf32> -> vector<8x128xf32>
    %321 = arith.addf %318, %320 : vector<8x128xf32>
    %322 = arith.negf %321 : vector<8x128xf32>
    %323 = math.exp %322 : vector<8x128xf32>
    %cst_76 = arith.constant 1.000000e+00 : f32
    %324 = vector.broadcast %cst_76 : f32 to vector<8x128xf32>
    %325 = arith.addf %324, %323 : vector<8x128xf32>
    %326 = arith.divf %324, %325 : vector<8x128xf32>
    %327 = vector.extract_strided_slice %326 {offsets = [0, 0], sizes = [8, 32], strides = [1, 1]} : vector<8x128xf32> to vector<8x32xf32>
    %328 = vector.extract_strided_slice %326 {offsets = [0, 32], sizes = [8, 32], strides = [1, 1]} : vector<8x128xf32> to vector<8x32xf32>
    %329 = vector.extract_strided_slice %326 {offsets = [0, 64], sizes = [8, 32], strides = [1, 1]} : vector<8x128xf32> to vector<8x32xf32>
    %cst_77 = arith.constant 2.000000e+00 : f32
    %330 = vector.broadcast %cst_77 : f32 to vector<8x32xf32>
    %331 = arith.mulf %330, %329 : vector<8x32xf32>
    %cst_78 = arith.constant 1.000000e+00 : f32
    %332 = vector.broadcast %cst_78 : f32 to vector<8x32xf32>
    %333 = arith.subf %331, %332 : vector<8x32xf32>
    %334 = vector.extract_strided_slice %326 {offsets = [0, 96], sizes = [8, 32], strides = [1, 1]} : vector<8x128xf32> to vector<8x32xf32>
    %335 = arith.mulf %328, %312 : vector<8x32xf32>
    %336 = arith.mulf %327, %333 : vector<8x32xf32>
    %337 = arith.addf %335, %336 : vector<8x32xf32>
    %338 = math.tanh %337 : vector<8x32xf32>
    %339 = arith.mulf %334, %338 : vector<8x32xf32>
    %340 = arith.truncf %162 : vector<8x32xf32> to vector<8x32xbf16>
    %cst_79 = arith.constant dense<0.000000e+00> : vector<8x128xf32>
    %341 = tpu.matmul %340, %185, %cst_79 {dimension_numbers = #tpu.dot_dimension_numbers<[1], [0], [0], [1], [0, 0, 1, 1], [], []>} : vector<8x32xbf16>, vector<32x128xbf16>, vector<8x128xf32> -> vector<8x128xf32>
    %342 = vector.broadcast %187 : vector<1x128xf32> to vector<8x128xf32>
    %343 = arith.addf %341, %342 : vector<8x128xf32>
    %344 = arith.truncf %339 : vector<8x32xf32> to vector<8x32xbf16>
    %cst_80 = arith.constant dense<0.000000e+00> : vector<8x128xf32>
    %345 = tpu.matmul %344, %186, %cst_80 {dimension_numbers = #tpu.dot_dimension_numbers<[1], [0], [0], [1], [0, 0, 1, 1], [], []>} : vector<8x32xbf16>, vector<32x128xbf16>, vector<8x128xf32> -> vector<8x128xf32>
    %346 = arith.addf %343, %345 : vector<8x128xf32>
    %347 = arith.negf %346 : vector<8x128xf32>
    %348 = math.exp %347 : vector<8x128xf32>
    %cst_81 = arith.constant 1.000000e+00 : f32
    %349 = vector.broadcast %cst_81 : f32 to vector<8x128xf32>
    %350 = arith.addf %349, %348 : vector<8x128xf32>
    %351 = arith.divf %349, %350 : vector<8x128xf32>
    %352 = vector.extract_strided_slice %351 {offsets = [0, 0], sizes = [8, 32], strides = [1, 1]} : vector<8x128xf32> to vector<8x32xf32>
    %353 = vector.extract_strided_slice %351 {offsets = [0, 32], sizes = [8, 32], strides = [1, 1]} : vector<8x128xf32> to vector<8x32xf32>
    %354 = vector.extract_strided_slice %351 {offsets = [0, 64], sizes = [8, 32], strides = [1, 1]} : vector<8x128xf32> to vector<8x32xf32>
    %cst_82 = arith.constant 2.000000e+00 : f32
    %355 = vector.broadcast %cst_82 : f32 to vector<8x32xf32>
    %356 = arith.mulf %355, %354 : vector<8x32xf32>
    %cst_83 = arith.constant 1.000000e+00 : f32
    %357 = vector.broadcast %cst_83 : f32 to vector<8x32xf32>
    %358 = arith.subf %356, %357 : vector<8x32xf32>
    %359 = vector.extract_strided_slice %351 {offsets = [0, 96], sizes = [8, 32], strides = [1, 1]} : vector<8x128xf32> to vector<8x32xf32>
    %360 = arith.mulf %353, %337 : vector<8x32xf32>
    %361 = arith.mulf %352, %358 : vector<8x32xf32>
    %362 = arith.addf %360, %361 : vector<8x32xf32>
    %363 = math.tanh %362 : vector<8x32xf32>
    %364 = arith.mulf %359, %363 : vector<8x32xf32>
    %365 = arith.truncf %184 : vector<8x32xf32> to vector<8x32xbf16>
    %cst_84 = arith.constant dense<0.000000e+00> : vector<8x128xf32>
    %366 = tpu.matmul %365, %185, %cst_84 {dimension_numbers = #tpu.dot_dimension_numbers<[1], [0], [0], [1], [0, 0, 1, 1], [], []>} : vector<8x32xbf16>, vector<32x128xbf16>, vector<8x128xf32> -> vector<8x128xf32>
    %367 = vector.broadcast %187 : vector<1x128xf32> to vector<8x128xf32>
    %368 = arith.addf %366, %367 : vector<8x128xf32>
    %369 = arith.truncf %364 : vector<8x32xf32> to vector<8x32xbf16>
    %cst_85 = arith.constant dense<0.000000e+00> : vector<8x128xf32>
    %370 = tpu.matmul %369, %186, %cst_85 {dimension_numbers = #tpu.dot_dimension_numbers<[1], [0], [0], [1], [0, 0, 1, 1], [], []>} : vector<8x32xbf16>, vector<32x128xbf16>, vector<8x128xf32> -> vector<8x128xf32>
    %371 = arith.addf %368, %370 : vector<8x128xf32>
    %372 = arith.negf %371 : vector<8x128xf32>
    %373 = math.exp %372 : vector<8x128xf32>
    %cst_86 = arith.constant 1.000000e+00 : f32
    %374 = vector.broadcast %cst_86 : f32 to vector<8x128xf32>
    %375 = arith.addf %374, %373 : vector<8x128xf32>
    %376 = arith.divf %374, %375 : vector<8x128xf32>
    %377 = vector.extract_strided_slice %376 {offsets = [0, 0], sizes = [8, 32], strides = [1, 1]} : vector<8x128xf32> to vector<8x32xf32>
    %378 = vector.extract_strided_slice %376 {offsets = [0, 32], sizes = [8, 32], strides = [1, 1]} : vector<8x128xf32> to vector<8x32xf32>
    %379 = vector.extract_strided_slice %376 {offsets = [0, 64], sizes = [8, 32], strides = [1, 1]} : vector<8x128xf32> to vector<8x32xf32>
    %cst_87 = arith.constant 2.000000e+00 : f32
    %380 = vector.broadcast %cst_87 : f32 to vector<8x32xf32>
    %381 = arith.mulf %380, %379 : vector<8x32xf32>
    %cst_88 = arith.constant 1.000000e+00 : f32
    %382 = vector.broadcast %cst_88 : f32 to vector<8x32xf32>
    %383 = arith.subf %381, %382 : vector<8x32xf32>
    %384 = vector.extract_strided_slice %376 {offsets = [0, 96], sizes = [8, 32], strides = [1, 1]} : vector<8x128xf32> to vector<8x32xf32>
    %385 = arith.mulf %378, %362 : vector<8x32xf32>
    %386 = arith.mulf %377, %383 : vector<8x32xf32>
    %387 = arith.addf %385, %386 : vector<8x32xf32>
    %388 = math.tanh %387 : vector<8x32xf32>
    %389 = arith.mulf %384, %388 : vector<8x32xf32>
    %390 = arith.truncf %389 : vector<8x32xf32> to vector<8x32xbf16>
    %c0_89 = arith.constant 0 : index
    %c0_90 = arith.constant 0 : index
    %391 = vector.load %arg7[%c0_89, %c0_90] : memref<32x128xbf16, #tpu.memory_space<vmem>>, vector<32x128xbf16>
    %cst_91 = arith.constant dense<0.000000e+00> : vector<8x128xf32>
    %392 = tpu.matmul %390, %391, %cst_91 {dimension_numbers = #tpu.dot_dimension_numbers<[1], [0], [0], [1], [0, 0, 1, 1], [], []>} : vector<8x32xbf16>, vector<32x128xbf16>, vector<8x128xf32> -> vector<8x128xf32>
    %c0_92 = arith.constant 0 : index
    %c0_93 = arith.constant 0 : index
    %393 = vector.load %arg8[%c0_92, %c0_93] : memref<1x128xf32, #tpu.memory_space<vmem>>, vector<1x128xf32>
    %394 = vector.broadcast %393 : vector<1x128xf32> to vector<8x128xf32>
    %395 = arith.addf %392, %394 : vector<8x128xf32>
    %c0_94 = arith.constant 0 : index
    %c0_95 = arith.constant 0 : index
    %396 = vector.load %arg9[%c0_94, %c0_95] : memref<8x128xf32, #tpu.memory_space<vmem>>, vector<8x128xf32>
    tpu.vector_store %arg9[%c0_94, %c0_95], %395 {strides = array<i32>} : memref<8x128xf32, #tpu.memory_space<vmem>>, vector<8x128xf32>,
    return
  }
}

</mosaic_0001>

<bundles_post_ra>
// kernel: dense_lstm_forward.1
= control target key start
LH: loop header
LB: loop body
LE: loop exit
PB: predicated region body
PF: predicated region fallthrough
CT: control target
= control target key end

     0   :  { %v2288_v0 = vmov 0.0   ;;  %vm2289_vm0 = vmmov 0   ;;  %vm80_vm1 = vcmask 130048   ;;  %v2290_v6 = vmov 0   ;;  %s2292_s19 = smov 32   ;;  %s2724_s1 = inlined_call_operand.vmem [shape: bf16[16,128], index: 1, kind: input, shape index: {}]   ;;  %s2725_s2 = inlined_call_operand.vmem [shape: bf16[32,128], index: 2, kind: input, shape index: {}]   ;;  %s2726_s0 = inlined_call_operand.vmem [shape: bf16[64,16], index: 0, kind: input, shape index: {}]   ;;  %s2727_s3 = inlined_call_operand.vmem [shape: f32[1,128], index: 3, kind: input, shape index: {}]   ;;  %s2728_s4 = inlined_call_operand.vmem [shape: bf16[32,128], index: 4, kind: input, shape index: {}]   ;;  %s2729_s5 = inlined_call_operand.vmem [shape: bf16[32,128], index: 5, kind: input, shape index: {}]   ;;  %s2730_s6 = inlined_call_operand.vmem [shape: f32[1,128], index: 6, kind: input, shape index: {}]   ;;  %s2731_s7 = inlined_call_operand.vmem [shape: bf16[32,128], index: 7, kind: input, shape index: {}]   ;;  %s2732_s8 = inlined_call_operand.vmem [shape: f32[1,128], index: 8, kind: input, shape index: {}]   ;;  %s2733_s9 = inlined_call_operand.vmem [shape: f32[8,128], index: 9, kind: output, shape index: {}]  }
   0x1   :  { %1934 = vmatprep.subr.bf16.mxu1 %v2288_v0  ;;  %v2179_v1 = vld [vmem:[%s2724_s1] sm:$0xff]   ;;  %1938 = vmatprep.mubr.msk.bf16.mxu1 %vm2289_vm0, %v2288_v0  ;;  %v2182_v4 = vld [vmem:[%s2726_s0 + $0x8] sm:$0xff]   ;;  %vm170_vm2 = vcmask 261120   ;;  %v2184_v51 = vld [vmem:[%s2726_s0 + $0x10] sm:$0xff]  }
   0x2   :  { %v2352_v2 = vld [vmem:[%s2725_s2] sm:$0xff]   ;;  %1924 = vmatprep.subr.bf16.mxu0 %v2179_v1  ;;  %v2366_v5 = vld [vmem:[%s2725_s2 + $0x8] sm:$0xff]   ;;  %v2185_v52 = vld [vmem:[%s2726_s0 + $0x18] sm:$0xff]  }
   0x3   :  { %v2181_v3 = vld [vmem:[%s2726_s0] sm:$0xff]   ;;  %1935 = vmatpush3.bf16.msra.mxu1 %v2352_v2  ;;  %1925 = vmatpush3.bf16.msra.mxu0 %v2179_v1 }
   0x4   :  { %1926 = vmatprep.mubr.msk.bf16.mxu0 %vm80_vm1, %v2181_v3  ;;  %1936 = vmatprep.subr.bf16.mxu1 %v2288_v0  ;;  %v2386_v7 = vld [vmem:[%s2727_s3] ss:$0 sm:$0xff]  ;;  %s2291_s3 = smov 64  }
   0x5   :  { %1950 = vmatprep.subr.bf16.mxu0 %v2288_v0 }
   0x6   :  { %1927 = vmatmul.mubr.msk.bf16.vlgmr.msra.gmra.mrb[0].mxu0 %vm80_vm1, %v2182_v4 }
   0x7   :  { %1937 = vmatpush3.bf16.msra.mxu1 %v2366_v5  ;;  %1951 = vmatpush3.bf16.msra.mxu0 %v2352_v2 }
   0x8   :  { %1942 = vmatprep.subr.bf16.mxu1 %v2288_v0  ;;  %1952 = vmatprep.subr.bf16.mxu0 %v2288_v0 }
   0x9   :  { %1930 = vmatprep.mubr.msk.bf16.mxu0 %vm80_vm1, %v2184_v51 }
   0xa   :  { %1939 = vmatmul.mubr.bf16.vlgmr.msra.gmra.mrb[0].mxu1 %v2290_v6 }
   0xb   :  { %1943 = vmatpush3.bf16.msra.mxu1 %v2352_v2  ;;  %1946 = vmatprep.mubr.msk.bf16.mxu1 %vm2289_vm0, %v2288_v0 }
   0xc   :  { %1944 = vmatprep.subr.bf16.mxu1 %v2288_v0  ;;  %1953 = vmatpush3.bf16.msra.mxu0 %v2366_v5 }
   0xd   :  { %1966 = vmatprep.subr.bf16.mxu0 %v2288_v0 }
   0xe   :  { %1931 = vmatmul.mubr.msk.bf16.gmra.mrb[4].mxu0 %vm80_vm1, %v2185_v52 }
   0xf   :  { %1945 = vmatpush3.bf16.msra.mxu1 %v2366_v5  ;;  %1954 = vmatprep.mubr.msk.bf16.mxu0 %vm2289_vm0, %v2288_v0 }
  0x10   :  { %1958 = vmatprep.subr.bf16.mxu1 %v2288_v0 }
  0xd9   :  { %v2388_v8 = vpop.f32.mrb[0].mxu0 }
  0xda   :  { %v127_v9 = vpop.f32.mrb[1].mxu0  ;;  %v136_v62 = vadd.f32 %v2388_v8, %v2386_v7 }
  0xdb   :  { %v128_v10 = vadd.f32 %v2386_v7, %v127_v9  ;;  %v2391_v11 = vpop.f32.mrb[2].mxu0 }
  0xdc   :  { %v130_v12 = vpop.f32.mrb[3].mxu0 }
  0xdd   :  { %v208_v13 = vpop.f32.mrb[0].mxu1  ;;  %v131_v34 = vadd.f32 %v2386_v7, %v130_v12 }
  0xde   :  { %v214_v14 = vadd.f32 %v208_v13, %v128_v10  ;;  %v1940_v15 = vpop.f32.mrb[1].mxu1 }
  0xdf   :  { %v211_v16 = vpop.f32.mrb[2].mxu1 }
  0xe0   :  { %v1781_v17 = vmul.f32 -1.442695, %v214_v14  ;;  %v1941_v18 = vpop.f32.mrb[3].mxu1 }
  0xe1   :  { %v2422_v57 = vpop.f32.mrb[4].mxu0 }
  0xe2   :  { %2192 = vpow2.f32 %v1781_v17  ;;  %v2424_v58 = vpop.f32.mrb[5].mxu0 }
  0xe3   :  { %v2426_v59 = vpop.f32.mrb[6].mxu0 }
  0xe4   :  { %v2428_v60 = vpop.f32.mrb[7].mxu0 }
  0xec   :  { %v2193_v19 = vpop.eup %2192 }
  0xed   :  { %v218_v20 = vadd.f32 1.0, %v2193_v19 }
  0xef   :  { %2194 = vrcp.f32 %v218_v20 }
  0xf9   :  { %v2195_v21 = vpop.eup %2194 }
  0xfa   :  { %v221_v22 = vmul.f32 2.0, %v2195_v21  ;;  %v223_v26 = vmul.f32 0.0, %v2195_v21 }
  0xfc   :  { %v1782_v23 = vadd.f32 -1.0, %v221_v22 }
  0xfe   :  { %225 = vrot.lane.b32.xlu0 %v1782_v23, %s2291_s3 }
 0x170   :  { %v226_v24 = vpop.permute.xlu0 %225 }
 0x171   :  { %v228_v25 = vmul.f32 %v2195_v21, %v226_v24 }
 0x173   :  { %230 = vrot.lane.b32.xlu0 %v228_v25, %s2292_s19 }
 0x1e5   :  { %v231_v27 = vpop.permute.xlu0 %230 }
 0x1e6   :  { %v233_v28 = vadd.f32 %v231_v27, %v223_v26  ;;  %v139_v26 = vadd.f32 %v2391_v11, %v2386_v7 }
 0x1e8   :  { %2196 = vtanh.f32 %v233_v28 }
 0x1f2   :  { %v2197_v29 = vpop.eup %2196 }
 0x1f3   :  { %236 = vrot.lane.b32.xlu1 %v2197_v29, %s2291_s3 }
 0x265   :  { %v237_v30 = vpop.permute.xlu1 %236 }
 0x266   :  { %v239_v31 = vmul.f32 %v2195_v21, %v237_v30 }
 0x268   :  { %v240_v32 = vpack.c.bf16 %v239_v31, %v239_v31 }
 0x26a   :  { %242 = vrot.lane.b32.xlu1 %v240_v32, %s2292_s19 }
 0x2dc   :  { %v2397_v33 = vpop.permute.xlu1 %242 }
 0x2dd   :  { %1947 = vmatmul.mubr.msk.bf16.vlgmr.msra.gmra.mrb[4].mxu1 %vm170_vm2, %v2397_v33 }
 0x2de   :  { %1959 = vmatpush3.bf16.msra.mxu1 %v2352_v2  ;;  %1962 = vmatprep.mubr.msk.bf16.mxu1 %vm2289_vm0, %v2288_v0 }
 0x2df   :  { %1960 = vmatprep.subr.bf16.mxu1 %v2288_v0 }
 0x2e2   :  { %1961 = vmatpush3.bf16.msra.mxu1 %v2366_v5 }
 0x2e3   :  { %1974 = vmatprep.subr.bf16.mxu1 %v2288_v0 }
 0x3b0   :  { %v281_v35 = vpop.f32.mrb[4].mxu1 }
 0x3b1   :  { %v287_v36 = vadd.f32 %v281_v35, %v131_v34  ;;  %v1948_v37 = vpop.f32.mrb[5].mxu1 }
 0x3b2   :  { %v284_v38 = vpop.f32.mrb[6].mxu1 }
 0x3b3   :  { %v1784_v39 = vmul.f32 -1.442695, %v287_v36  ;;  %v1949_v40 = vpop.f32.mrb[7].mxu1 }
 0x3b5   :  { %2198 = vpow2.f32 %v1784_v39 }
 0x3bf   :  { %v2199_v41 = vpop.eup %2198 }
 0x3c0   :  { %v291_v42 = vadd.f32 1.0, %v2199_v41 }
 0x3c2   :  { %2200 = vrcp.f32 %v291_v42 }
 0x3cc   :  { %v2201_v43 = vpop.eup %2200 }
 0x3cd   :  { %v294_v44 = vmul.f32 2.0, %v2201_v43  ;;  %v296_v48 = vmul.f32 %v2201_v43, %v233_v28 }
 0x3cf   :  { %v1785_v45 = vadd.f32 -1.0, %v294_v44 }
 0x3d1   :  { %298 = vrot.lane.b32.xlu0 %v1785_v45, %s2291_s3 }
 0x443   :  { %v299_v46 = vpop.permute.xlu0 %298 }
 0x444   :  { %v301_v47 = vmul.f32 %v2201_v43, %v299_v46 }
 0x446   :  { %303 = vrot.lane.b32.xlu1 %v301_v47, %s2292_s19 }
 0x4b8   :  { %v304_v49 = vpop.permute.xlu1 %303 }
 0x4b9   :  { %v306_v50 = vadd.f32 %v304_v49, %v296_v48  ;;  %v144_v48 = vadd.f32 %v2386_v7, %v2424_v58 }
 0x4bb   :  { %2202 = vtanh.f32 %v306_v50 }
 0x4c5   :  { %v2203_v53 = vpop.eup %2202 }
 0x4c6   :  { %309 = vrot.lane.b32.xlu0 %v2203_v53, %s2291_s3 }
 0x538   :  { %v310_v54 = vpop.permute.xlu0 %309 }
 0x539   :  { %v312_v55 = vmul.f32 %v2201_v43, %v310_v54 }
 0x53b   :  { %v313_v56 = vpack.c.bf16 %v312_v55, %v312_v55 }
 0x53d   :  { %315 = vrot.lane.b32.xlu1 %v313_v56, %s2292_s19 }
 0x5af   :  { %v2430_v61 = vpop.permute.xlu1 %315 }
 0x5b0   :  { %1955 = vmatmul.mubr.msk.bf16.vlgmr.msra.gmra.mrb[8].mxu0 %vm170_vm2, %v2430_v61 }
 0x5b1   :  { %1967 = vmatpush3.bf16.msra.mxu0 %v2352_v2  ;;  %1970 = vmatprep.mubr.msk.bf16.mxu0 %vm2289_vm0, %v2288_v0 }
 0x5b2   :  { %1968 = vmatprep.subr.bf16.mxu0 %v2288_v0 }
 0x5b5   :  { %1969 = vmatpush3.bf16.msra.mxu0 %v2366_v5 }
 0x5b6   :  { %1982 = vmatprep.subr.bf16.mxu0 %v2288_v0 }
 0x683   :  { %v354_v63 = vpop.f32.mrb[8].mxu0 }
 0x684   :  { %v360_v1 = vadd.f32 %v354_v63, %v136_v62  ;;  %v1956_v3 = vpop.f32.mrb[9].mxu0 }
 0x685   :  { %v357_v4 = vpop.f32.mrb[10].mxu0 }
 0x686   :  { %v1787_v9 = vmul.f32 -1.442695, %v360_v1  ;;  %v1957_v10 = vpop.f32.mrb[11].mxu0 }
 0x688   :  { %2204 = vpow2.f32 %v1787_v9 }
 0x692   :  { %v2205_v12 = vpop.eup %2204 }
 0x693   :  { %v364_v13 = vadd.f32 1.0, %v2205_v12 }
 0x695   :  { %2206 = vrcp.f32 %v364_v13 }
 0x69f   :  { %v2207_v14 = vpop.eup %2206 }
 0x6a0   :  { %v367_v15 = vmul.f32 2.0, %v2207_v14  ;;  %v369_v8 = vmul.f32 %v2207_v14, %v306_v50 }
 0x6a2   :  { %v1788_v16 = vadd.f32 -1.0, %v367_v15 }
 0x6a4   :  { %371 = vrot.lane.b32.xlu0 %v1788_v16, %s2291_s3 }
 0x716   :  { %v372_v17 = vpop.permute.xlu0 %371 }
 0x717   :  { %v374_v18 = vmul.f32 %v2207_v14, %v372_v17  ;;  %v147_v17 = vadd.f32 %v2386_v7, %v2428_v60 }
 0x719   :  { %376 = vrot.lane.b32.xlu1 %v374_v18, %s2292_s19 }
 0x78b   :  { %v377_v19 = vpop.permute.xlu1 %376 }
 0x78c   :  { %v379_v20 = vadd.f32 %v377_v19, %v369_v8 }
 0x78e   :  { %2208 = vtanh.f32 %v379_v20 }
 0x798   :  { %v2209_v21 = vpop.eup %2208 }
 0x799   :  { %382 = vrot.lane.b32.xlu0 %v2209_v21, %s2291_s3 }
 0x80b   :  { %v383_v22 = vpop.permute.xlu0 %382 }
 0x80c   :  { %v385_v23 = vmul.f32 %v2207_v14, %v383_v22 }
 0x80e   :  { %v386_v24 = vpack.c.bf16 %v385_v23, %v385_v23 }
 0x810   :  { %388 = vrot.lane.b32.xlu1 %v386_v24, %s2292_s19 }
 0x882   :  { %v2446_v25 = vpop.permute.xlu1 %388 }
 0x883   :  { %1963 = vmatmul.mubr.msk.bf16.vlgmr.msra.gmra.mrb[8].mxu1 %vm170_vm2, %v2446_v25 }
 0x884   :  { %1975 = vmatpush3.bf16.msra.mxu1 %v2352_v2  ;;  %1978 = vmatprep.mubr.msk.bf16.mxu1 %vm2289_vm0, %v2288_v0 }
 0x885   :  { %1976 = vmatprep.subr.bf16.mxu1 %v2288_v0 }
 0x888   :  { %1977 = vmatpush3.bf16.msra.mxu1 %v2366_v5 }
 0x889   :  { %1990 = vmatprep.subr.bf16.mxu1 %v2288_v0 }
 0x956   :  { %v427_v27 = vpop.f32.mrb[8].mxu1 }
 0x957   :  { %v433_v28 = vadd.f32 %v427_v27, %v139_v26  ;;  %v1964_v29 = vpop.f32.mrb[9].mxu1 }
 0x958   :  { %v430_v30 = vpop.f32.mrb[10].mxu1 }
 0x959   :  { %v1790_v31 = vmul.f32 -1.442695, %v433_v28  ;;  %v1965_v32 = vpop.f32.mrb[11].mxu1 }
 0x95b   :  { %2210 = vpow2.f32 %v1790_v31 }
 0x965   :  { %v2211_v34 = vpop.eup %2210 }
 0x966   :  { %v437_v35 = vadd.f32 1.0, %v2211_v34 }
 0x968   :  { %2212 = vrcp.f32 %v437_v35 }
 0x972   :  { %v2213_v36 = vpop.eup %2212 }
 0x973   :  { %v440_v37 = vmul.f32 2.0, %v2213_v36  ;;  %v442_v11 = vmul.f32 %v2213_v36, %v379_v20 }
 0x975   :  { %v1791_v38 = vadd.f32 -1.0, %v440_v37 }
 0x977   :  { %444 = vrot.lane.b32.xlu0 %v1791_v38, %s2291_s3  ;;  %v2510_v38 = vld [vmem:[%s2728_s4 + $0x8] sm:$0xff]  }
 0x9e9   :  { %v445_v39 = vpop.permute.xlu0 %444 }
 0x9ea   :  { %v447_v40 = vmul.f32 %v2213_v36, %v445_v39  ;;  %v2519_v39 = vld [vmem:[%s2729_s5] sm:$0xff]  }
 0x9ec   :  { %449 = vrot.lane.b32.xlu1 %v447_v40, %s2292_s19  ;;  %v2528_v40 = vld [vmem:[%s2729_s5 + $0x8] sm:$0xff]  }
 0xa5e   :  { %v450_v41 = vpop.permute.xlu1 %449 }
 0xa5f   :  { %v452_v42 = vadd.f32 %v450_v41, %v442_v11 }
 0xa61   :  { %2214 = vtanh.f32 %v452_v42 }
 0xa6b   :  { %v2215_v43 = vpop.eup %2214 }
 0xa6c   :  { %455 = vrot.lane.b32.xlu0 %v2215_v43, %s2291_s3 }
 0xade   :  { %v456_v44 = vpop.permute.xlu0 %455 }
 0xadf   :  { %v458_v45 = vmul.f32 %v2213_v36, %v456_v44  ;;  %v2500_v36 = vld [vmem:[%s2728_s4] sm:$0xff]  }
 0xae1   :  { %v459_v46 = vpack.c.bf16 %v458_v45, %v458_v45 }
 0xae3   :  { %461 = vrot.lane.b32.xlu1 %v459_v46, %s2292_s19  ;;  %v2555_v46 = vld [vmem:[%s2730_s6] ss:$0 sm:$0xff] }
 0xb55   :  { %v2462_v47 = vpop.permute.xlu1 %461 }
 0xb56   :  { %1971 = vmatmul.mubr.msk.bf16.vlgmr.msra.gmra.mrb[12].mxu0 %vm170_vm2, %v2462_v47 }
 0xb57   :  { %1983 = vmatpush3.bf16.msra.mxu0 %v2352_v2  ;;  %1986 = vmatprep.mubr.msk.bf16.mxu0 %vm2289_vm0, %v2288_v0 }
 0xb58   :  { %1984 = vmatprep.subr.bf16.mxu0 %v2288_v0 }
 0xb5b   :  { %1985 = vmatpush3.bf16.msra.mxu0 %v2366_v5 }
 0xb5c   :  { %1998 = vmatprep.subr.bf16.mxu0 %v2288_v0 }
 0xc29   :  { %v500_v49 = vpop.f32.mrb[12].mxu0 }
 0xc2a   :  { %v506_v50 = vadd.f32 %v500_v49, %v144_v48  ;;  %v1972_v51 = vpop.f32.mrb[13].mxu0 }
 0xc2b   :  { %v503_v52 = vpop.f32.mrb[14].mxu0 }
 0xc2c   :  { %v1793_v53 = vmul.f32 -1.442695, %v506_v50  ;;  %v1973_v54 = vpop.f32.mrb[15].mxu0 }
 0xc2e   :  { %2216 = vpow2.f32 %v1793_v53 }
 0xc38   :  { %v2217_v55 = vpop.eup %2216 }
 0xc39   :  { %v510_v56 = vadd.f32 1.0, %v2217_v55 }
 0xc3b   :  { %2218 = vrcp.f32 %v510_v56 }
 0xc45   :  { %v2219_v62 = vpop.eup %2218 }
 0xc46   :  { %v513_v63 = vmul.f32 2.0, %v2219_v62  ;;  %v515_v58 = vmul.f32 %v2219_v62, %v452_v42 }
 0xc48   :  { %v1794_v1 = vadd.f32 -1.0, %v513_v63 }
 0xc4a   :  { %517 = vrot.lane.b32.xlu0 %v1794_v1, %s2291_s3 }
 0xcbc   :  { %v518_v3 = vpop.permute.xlu0 %517 }
 0xcbd   :  { %v520_v4 = vmul.f32 %v2219_v62, %v518_v3 }
 0xcbf   :  { %522 = vrot.lane.b32.xlu1 %v520_v4, %s2292_s19 }
 0xd31   :  { %v523_v9 = vpop.permute.xlu1 %522 }
 0xd32   :  { %v525_v10 = vadd.f32 %v523_v9, %v515_v58 }
 0xd34   :  { %2220 = vtanh.f32 %v525_v10 }
 0xd3e   :  { %v2221_v12 = vpop.eup %2220 }
 0xd3f   :  { %528 = vrot.lane.b32.xlu0 %v2221_v12, %s2291_s3 }
 0xdb1   :  { %v529_v13 = vpop.permute.xlu0 %528 }
 0xdb2   :  { %v531_v14 = vmul.f32 %v2219_v62, %v529_v13 }
 0xdb4   :  { %v532_v15 = vpack.c.bf16 %v531_v14, %v531_v14 }
 0xdb6   :  { %534 = vrot.lane.b32.xlu1 %v532_v15, %s2292_s19 }
 0xe28   :  { %v2478_v16 = vpop.permute.xlu1 %534 }
 0xe29   :  { %1979 = vmatmul.mubr.msk.bf16.vlgmr.msra.gmra.mrb[12].mxu1 %vm170_vm2, %v2478_v16 }
 0xe2a   :  { %1991 = vmatpush3.bf16.msra.mxu1 %v2352_v2  ;;  %1994 = vmatprep.mubr.msk.bf16.mxu1 %vm2289_vm0, %v2288_v0 }
 0xe2b   :  { %1992 = vmatprep.subr.bf16.mxu1 %v2288_v0 }
 0xe2e   :  { %1993 = vmatpush3.bf16.msra.mxu1 %v2366_v5 }
 0xe2f   :  { %2014 = vmatprep.subr.bf16.mxu1 %v2288_v0 }
 0xefc   :  { %v573_v18 = vpop.f32.mrb[12].mxu1 }
 0xefd   :  { %v579_v8 = vadd.f32 %v573_v18, %v147_v17  ;;  %v1980_v19 = vpop.f32.mrb[13].mxu1 }
 0xefe   :  { %v576_v20 = vpop.f32.mrb[14].mxu1 }
 0xeff   :  { %v1796_v21 = vmul.f32 -1.442695, %v579_v8  ;;  %v1981_v22 = vpop.f32.mrb[15].mxu1 }
 0xf01   :  { %2222 = vpow2.f32 %v1796_v21 }
 0xf0b   :  { %v2223_v2 = vpop.eup %2222 }
 0xf0c   :  { %v583_v23 = vadd.f32 1.0, %v2223_v2 }
 0xf0e   :  { %2224 = vrcp.f32 %v583_v23 }
 0xf18   :  { %v2225_v24 = vpop.eup %2224 }
 0xf19   :  { %v586_v26 = vmul.f32 2.0, %v2225_v24  ;;  %v588_v60 = vmul.f32 %v2225_v24, %v525_v10 }
 0xf1b   :  { %v1797_v27 = vadd.f32 -1.0, %v586_v26 }
 0xf1d   :  { %590 = vrot.lane.b32.xlu0 %v1797_v27, %s2291_s3 }
 0xf8f   :  { %v591_v5 = vpop.permute.xlu0 %590 }
 0xf90   :  { %v593_v28 = vmul.f32 %v2225_v24, %v591_v5 }
 0xf92   :  { %595 = vrot.lane.b32.xlu1 %v593_v28, %s2292_s19 }
0x1004   :  { %v596_v29 = vpop.permute.xlu1 %595 }
0x1005   :  { %v2492_v30 = vadd.f32 %v596_v29, %v588_v60 }
0x1007   :  { %2226 = vtanh.f32 %v2492_v30 }
0x1011   :  { %v2227_v31 = vpop.eup %2226 }
0x1012   :  { %601 = vrot.lane.b32.xlu0 %v2227_v31, %s2291_s3 }
0x1084   :  { %v602_v32 = vpop.permute.xlu0 %601 }
0x1085   :  { %v604_v34 = vmul.f32 %v2225_v24, %v602_v32 }
0x1087   :  { %v605_v35 = vpack.c.bf16 %v604_v34, %v604_v34 }
0x1089   :  { %607 = vrot.lane.b32.xlu1 %v605_v35, %s2292_s19 }
0x10fb   :  { %v2502_v37 = vpop.permute.xlu1 %607 }
0x10fc   :  { %1987 = vmatmul.mubr.msk.bf16.vlgmr.msra.gmra.mrb[16].mxu0 %vm170_vm2, %v2502_v37 }
0x10fd   :  { %1999 = vmatpush3.bf16.msra.mxu0 %v2500_v36  ;;  %2002 = vmatprep.mubr.msk.bf16.mxu0 %vm2289_vm0, %v2288_v0 }
0x10fe   :  { %2000 = vmatprep.subr.bf16.mxu0 %v2288_v0 }
0x1101   :  { %2001 = vmatpush3.bf16.msra.mxu0 %v2510_v38 }
0x1102   :  { %2006 = vmatprep.subr.bf16.mxu0 %v2288_v0 }
0x1104   :  { %2003 = vmatmul.mubr.msk.bf16.vlgmr.msra.gmra.mrb[20].mxu0 %vm170_vm2, %v2397_v33 }
0x1105   :  { %2007 = vmatpush3.bf16.msra.mxu0 %v2519_v39  ;;  %2010 = vmatprep.mubr.msk.bf16.mxu0 %vm2289_vm0, %v2288_v0 }
0x1106   :  { %2008 = vmatprep.subr.bf16.mxu0 %v2288_v0 }
0x1109   :  { %2009 = vmatpush3.bf16.msra.mxu0 %v2528_v40 }
0x110a   :  { %2030 = vmatprep.subr.bf16.mxu0 %v2288_v0 }
0x1110   :  { %2011 = vmatmul.mubr.bf16.vlgmr.msra.gmra.mrb[20].mxu0 %v2290_v6  ;;  %v152_v6 = vadd.f32 %v2422_v57, %v2386_v7 }
0x1111   :  { %2031 = vmatpush3.bf16.msra.mxu0 %v2500_v36  ;;  %2034 = vmatprep.mubr.msk.bf16.mxu0 %vm2289_vm0, %v2288_v0 }
0x1112   :  { %2032 = vmatprep.subr.bf16.mxu0 %v2288_v0 }
0x1115   :  { %2033 = vmatpush3.bf16.msra.mxu0 %v2510_v38 }
0x1116   :  { %2038 = vmatprep.subr.bf16.mxu0 %v2288_v0 }
0x1118   :  { %2035 = vmatmul.mubr.msk.bf16.vlgmr.msra.gmra.mrb[24].mxu0 %vm170_vm2, %v2446_v25 }
0x1119   :  { %2039 = vmatpush3.bf16.msra.mxu0 %v2519_v39  ;;  %2042 = vmatprep.mubr.msk.bf16.mxu0 %vm2289_vm0, %v2288_v0 }
0x111a   :  { %2040 = vmatprep.subr.bf16.mxu0 %v2288_v0 }
0x111d   :  { %2041 = vmatpush3.bf16.msra.mxu0 %v2528_v40 }
0x111e   :  { %2062 = vmatprep.subr.bf16.mxu0 %v2288_v0 }
0x11cf   :  { %v646_v33 = vpop.f32.mrb[16].mxu0 }
0x11d0   :  { %v652_v11 = vadd.f32 %v646_v33, %v152_v6  ;;  %v1988_v41 = vpop.f32.mrb[17].mxu0 }
0x11d1   :  { %v649_v42 = vpop.f32.mrb[18].mxu0 }
0x11d2   :  { %v1799_v43 = vmul.f32 -1.442695, %v652_v11  ;;  %v1989_v25 = vpop.f32.mrb[19].mxu0 }
0x11d4   :  { %2228 = vpow2.f32 %v1799_v43 }
0x11de   :  { %v2229_v44 = vpop.eup %2228 }
0x11df   :  { %v656_v45 = vadd.f32 1.0, %v2229_v44 }
0x11e1   :  { %2230 = vrcp.f32 %v656_v45 }
0x11e3   :  { %v864_v48 = vpop.f32.mrb[20].mxu0 }
0x11e4   :  { %v2134_v49 = vadd.f32 %v2555_v46, %v864_v48  ;;  %v2012_v50 = vpop.f32.mrb[21].mxu0 }
0x11e5   :  { %v867_v57 = vpop.f32.mrb[22].mxu0 }
0x11e6   :  { %v1810_v51 = vmul.f32 -1.442695, %v2134_v49  ;;  %v2013_v52 = vpop.f32.mrb[23].mxu0 }
0x11e8   :  { %2232 = vpow2.f32 %v1810_v51 }
0x11eb   :  { %v2231_v53 = vpop.eup %2230 }
0x11ec   :  { %v659_v54 = vmul.f32 2.0, %v2231_v53  ;;  %v661_v12 = vmul.f32 %v2231_v53, %v2492_v30 }
0x11ee   :  { %v1800_v55 = vadd.f32 -1.0, %v659_v54 }
0x11f0   :  { %663 = vrot.lane.b32.xlu0 %v1800_v55, %s2291_s3 }
0x11f2   :  { %v2233_v56 = vpop.eup %2232 }
0x11f3   :  { %v874_v62 = vadd.f32 1.0, %v2233_v56 }
0x11f5   :  { %2234 = vrcp.f32 %v874_v62 }
0x11ff   :  { %v2235_v63 = vpop.eup %2234 }
0x1200   :  { %v877_v1 = vmul.f32 2.0, %v2235_v63  ;;  %v879_v17 = vmul.f32 0.0, %v2235_v63 }
0x1202   :  { %v1811_v3 = vadd.f32 -1.0, %v877_v1 }
0x1204   :  { %881 = vrot.lane.b32.xlu1 %v1811_v3, %s2291_s3 }
0x1262   :  { %v664_v4 = vpop.permute.xlu0 %663 }
0x1263   :  { %v666_v58 = vmul.f32 %v2231_v53, %v664_v4 }
0x1265   :  { %668 = vrot.lane.b32.xlu0 %v666_v58, %s2292_s19 }
0x1276   :  { %v882_v9 = vpop.permute.xlu1 %881 }
0x1277   :  { %v884_v10 = vmul.f32 %v2235_v63, %v882_v9 }
0x1279   :  { %886 = vrot.lane.b32.xlu1 %v884_v10, %s2292_s19 }
0x12d7   :  { %v669_v13 = vpop.permute.xlu0 %668 }
0x12d8   :  { %v2563_v14 = vadd.f32 %v669_v13, %v661_v12 }
0x12da   :  { %2236 = vtanh.f32 %v2563_v14 }
0x12e4   :  { %v2237_v15 = vpop.eup %2236 }
0x12e5   :  { %674 = vrot.lane.b32.xlu0 %v2237_v15, %s2291_s3 }
0x12eb   :  { %v887_v18 = vpop.permute.xlu1 %886 }
0x12ec   :  { %v889_v8 = vadd.f32 %v887_v18, %v879_v17 }
0x12ee   :  { %2238 = vtanh.f32 %v889_v8 }
0x12f8   :  { %v2239_v19 = vpop.eup %2238 }
0x12f9   :  { %892 = vrot.lane.b32.xlu1 %v2239_v19, %s2291_s3 }
0x1357   :  { %v675_v20 = vpop.permute.xlu0 %674 }
0x1358   :  { %v677_v21 = vmul.f32 %v2231_v53, %v675_v20 }
0x135a   :  { %v678_v22 = vpack.c.bf16 %v677_v21, %v677_v21 }
0x135c   :  { %680 = vrot.lane.b32.xlu0 %v678_v22, %s2292_s19 }
0x136b   :  { %v893_v2 = vpop.permute.xlu1 %892 }
0x136c   :  { %v895_v23 = vmul.f32 %v2235_v63, %v893_v2 }
0x136e   :  { %v936_v24 = vpack.c.bf16 %v895_v23, %v895_v23 }
0x1370   :  { %938 = vrot.lane.b32.xlu1 %v936_v24, %s2292_s19 }
0x13ce   :  { %v2570_v26 = vpop.permute.xlu0 %680 }
0x13cf   :  { %1995 = vmatmul.mubr.msk.bf16.vlgmr.msra.gmra.mrb[16].mxu1 %vm170_vm2, %v2570_v26 }
0x13d0   :  { %2015 = vmatpush3.bf16.msra.mxu1 %v2500_v36  ;;  %2018 = vmatprep.mubr.msk.bf16.mxu1 %vm2289_vm0, %v2288_v0 }
0x13d1   :  { %2016 = vmatprep.subr.bf16.mxu1 %v2288_v0 }
0x13d4   :  { %2017 = vmatpush3.bf16.msra.mxu1 %v2510_v38 }
0x13d5   :  { %2022 = vmatprep.subr.bf16.mxu1 %v2288_v0 }
0x13d7   :  { %2019 = vmatmul.mubr.msk.bf16.vlgmr.msra.gmra.mrb[20].mxu1 %vm170_vm2, %v2430_v61  ;;  %v155_v61 = vadd.f32 %v2426_v59, %v2386_v7 }
0x13d8   :  { %2023 = vmatpush3.bf16.msra.mxu1 %v2519_v39  ;;  %2026 = vmatprep.mubr.msk.bf16.mxu1 %vm2289_vm0, %v2288_v0 }
0x13d9   :  { %2024 = vmatprep.subr.bf16.mxu1 %v2288_v0 }
0x13dc   :  { %2025 = vmatpush3.bf16.msra.mxu1 %v2528_v40 }
0x13dd   :  { %2046 = vmatprep.subr.bf16.mxu1 %v2288_v0 }
0x13e2   :  { %v939_v27 = vpop.permute.xlu1 %938 }
0x13e3   :  { %2027 = vmatmul.mubr.msk.bf16.vlgmr.msra.gmra.mrb[20].mxu1 %vm170_vm2, %v939_v27 }
0x13e4   :  { %2047 = vmatpush3.bf16.msra.mxu1 %v2500_v36  ;;  %2050 = vmatprep.mubr.msk.bf16.mxu1 %vm2289_vm0, %v2288_v0 }
0x13e5   :  { %2048 = vmatprep.subr.bf16.mxu1 %v2288_v0 }
0x13e8   :  { %2049 = vmatpush3.bf16.msra.mxu1 %v2510_v38 }
0x13e9   :  { %2054 = vmatprep.subr.bf16.mxu1 %v2288_v0 }
0x13eb   :  { %2051 = vmatmul.mubr.msk.bf16.vlgmr.msra.gmra.mrb[24].mxu1 %vm170_vm2, %v2462_v47 }
0x13ec   :  { %2055 = vmatpush3.bf16.msra.mxu1 %v2519_v39  ;;  %2058 = vmatprep.mubr.msk.bf16.mxu1 %vm2289_vm0, %v2288_v0 }
0x13ed   :  { %2056 = vmatprep.subr.bf16.mxu1 %v2288_v0 }
0x13f0   :  { %2057 = vmatpush3.bf16.msra.mxu1 %v2528_v40 }
0x13f1   :  { %2078 = vmatprep.subr.bf16.mxu1 %v2288_v0 }
0x14a2   :  { %v719_v5 = vpop.f32.mrb[16].mxu1 }
0x14a3   :  { %v2605_v28 = vadd.f32 %v719_v5, %v155_v61  ;;  %v1996_v60 = vpop.f32.mrb[17].mxu1 }
0x14a4   :  { %v722_v29 = vpop.f32.mrb[18].mxu1 }
0x14a5   :  { %v1997_v47 = vpop.f32.mrb[19].mxu1 }
0x14b6   :  { %v977_v30 = vpop.f32.mrb[20].mxu1 }
0x14b7   :  { %v2135_v31 = vadd.f32 %v2555_v46, %v977_v30  ;;  %v2028_v32 = vpop.f32.mrb[21].mxu1 }
0x14b8   :  { %v980_v34 = vpop.f32.mrb[22].mxu1 }
0x14b9   :  { %v1814_v35 = vmul.f32 -1.442695, %v2135_v31  ;;  %v2029_v6 = vpop.f32.mrb[23].mxu1 }
0x14bb   :  { %2240 = vpow2.f32 %v1814_v35 }
0x14c5   :  { %v2241_v33 = vpop.eup %2240 }
0x14c6   :  { %v987_v11 = vadd.f32 1.0, %v2241_v33 }
0x14c8   :  { %2242 = vrcp.f32 %v987_v11 }
0x14d2   :  { %v2243_v41 = vpop.eup %2242 }
0x14d3   :  { %v990_v42 = vmul.f32 2.0, %v2243_v41  ;;  %v992_v25 = vmul.f32 %v2243_v41, %v889_v8 }
0x14d5   :  { %v1815_v7 = vadd.f32 -1.0, %v990_v42 }
0x14d7   :  { %994 = vrot.lane.b32.xlu0 %v1815_v7, %s2291_s3 }
0x1549   :  { %v995_v59 = vpop.permute.xlu0 %994 }
0x154a   :  { %v997_v43 = vmul.f32 %v2243_v41, %v995_v59 }
0x154c   :  { %999 = vrot.lane.b32.xlu1 %v997_v43, %s2292_s19 }
0x15be   :  { %v1000_v44 = vpop.permute.xlu1 %999 }
0x15bf   :  { %v1002_v45 = vadd.f32 %v1000_v44, %v992_v25 }
0x15c1   :  { %2244 = vtanh.f32 %v1002_v45 }
0x15cb   :  { %v2245_v48 = vpop.eup %2244 }
0x15cc   :  { %1005 = vrot.lane.b32.xlu0 %v2245_v48, %s2291_s3 }
0x163e   :  { %v1006_v49 = vpop.permute.xlu0 %1005 }
0x163f   :  { %v1008_v50 = vmul.f32 %v2243_v41, %v1006_v49 }
0x1641   :  { %v1049_v57 = vpack.c.bf16 %v1008_v50, %v1008_v50 }
0x1643   :  { %1051 = vrot.lane.b32.xlu1 %v1049_v57, %s2292_s19 }
0x16b5   :  { %v1052_v51 = vpop.permute.xlu1 %1051 }
0x16b6   :  { %2043 = vmatmul.mubr.msk.bf16.vlgmr.msra.gmra.mrb[24].mxu0 %vm170_vm2, %v1052_v51 }
0x16b7   :  { %2063 = vmatpush3.bf16.msra.mxu0 %v2500_v36  ;;  %2066 = vmatprep.mubr.msk.bf16.mxu0 %vm2289_vm0, %v2288_v0 }
0x16b8   :  { %2064 = vmatprep.subr.bf16.mxu0 %v2288_v0 }
0x16bb   :  { %2065 = vmatpush3.bf16.msra.mxu0 %v2510_v38 }
0x16bc   :  { %2070 = vmatprep.subr.bf16.mxu0 %v2288_v0 }
0x16be   :  { %2067 = vmatmul.mubr.msk.bf16.vlgmr.msra.gmra.mrb[28].mxu0 %vm170_vm2, %v2478_v16 }
0x16bf   :  { %2071 = vmatpush3.bf16.msra.mxu0 %v2519_v39  ;;  %2074 = vmatprep.mubr.msk.bf16.mxu0 %vm2289_vm0, %v2288_v0 }
0x16c0   :  { %2072 = vmatprep.subr.bf16.mxu0 %v2288_v0 }
0x16c3   :  { %2073 = vmatpush3.bf16.msra.mxu0 %v2528_v40 }
0x16c4   :  { %2094 = vmatprep.subr.bf16.mxu0 %v2288_v0 }
0x1789   :  { %v1090_v52 = vpop.f32.mrb[24].mxu0 }
0x178a   :  { %v2136_v53 = vadd.f32 %v2555_v46, %v1090_v52  ;;  %v2044_v54 = vpop.f32.mrb[25].mxu0 }
0x178b   :  { %v1093_v55 = vpop.f32.mrb[26].mxu0 }
0x178c   :  { %v1818_v56 = vmul.f32 -1.442695, %v2136_v53  ;;  %v2045_v62 = vpop.f32.mrb[27].mxu0 }
0x178e   :  { %2246 = vpow2.f32 %v1818_v56 }
0x1798   :  { %v2247_v16 = vpop.eup %2246 }
0x1799   :  { %v1100_v63 = vadd.f32 1.0, %v2247_v16 }
0x179b   :  { %2248 = vrcp.f32 %v1100_v63 }
0x17a5   :  { %v2249_v1 = vpop.eup %2248 }
0x17a6   :  { %v1103_v3 = vmul.f32 2.0, %v2249_v1  ;;  %v1105_v10 = vmul.f32 %v2249_v1, %v1002_v45 }
0x17a8   :  { %v1819_v4 = vadd.f32 -1.0, %v1103_v3 }
0x17aa   :  { %1107 = vrot.lane.b32.xlu0 %v1819_v4, %s2291_s3 }
0x181c   :  { %v1108_v58 = vpop.permute.xlu0 %1107 }
0x181d   :  { %v1110_v9 = vmul.f32 %v2249_v1, %v1108_v58 }
0x181f   :  { %1112 = vrot.lane.b32.xlu1 %v1110_v9, %s2292_s19 }
0x1891   :  { %v1113_v12 = vpop.permute.xlu1 %1112 }
0x1892   :  { %v1115_v13 = vadd.f32 %v1113_v12, %v1105_v10 }
0x1894   :  { %2250 = vtanh.f32 %v1115_v13 }
0x189e   :  { %v2251_v15 = vpop.eup %2250 }
0x189f   :  { %1118 = vrot.lane.b32.xlu0 %v2251_v15, %s2291_s3 }
0x1911   :  { %v1119_v17 = vpop.permute.xlu0 %1118 }
0x1912   :  { %v1121_v18 = vmul.f32 %v2249_v1, %v1119_v17 }
0x1914   :  { %v1162_v8 = vpack.c.bf16 %v1121_v18, %v1121_v18  ;;  %v1802_v18 = vmul.f32 -1.442695, %v2605_v28 }
0x1916   :  { %1164 = vrot.lane.b32.xlu1 %v1162_v8, %s2292_s19 }
0x1988   :  { %v1165_v19 = vpop.permute.xlu1 %1164 }
0x1989   :  { %2059 = vmatmul.mubr.msk.bf16.vlgmr.msra.gmra.mrb[24].mxu1 %vm170_vm2, %v1165_v19 }
0x198a   :  { %2079 = vmatpush3.bf16.msra.mxu1 %v2500_v36  ;;  %2082 = vmatprep.mubr.msk.bf16.mxu1 %vm2289_vm0, %v2288_v0 }
0x198b   :  { %2080 = vmatprep.subr.bf16.mxu1 %v2288_v0 }
0x198e   :  { %2081 = vmatpush3.bf16.msra.mxu1 %v2510_v38 }
0x198f   :  { %2086 = vmatprep.subr.bf16.mxu1 %v2288_v0 }
0x1991   :  { %2083 = vmatmul.mubr.msk.bf16.vlgmr.msra.gmra.mrb[28].mxu1 %vm170_vm2, %v2502_v37 }
0x1992   :  { %2087 = vmatpush3.bf16.msra.mxu1 %v2519_v39  ;;  %2090 = vmatprep.mubr.msk.bf16.mxu1 %vm2289_vm0, %v2288_v0 }
0x1993   :  { %2088 = vmatprep.subr.bf16.mxu1 %v2288_v0 }
0x1996   :  { %2089 = vmatpush3.bf16.msra.mxu1 %v2528_v40 }
0x1997   :  { %2110 = vmatprep.subr.bf16.mxu1 %v2288_v0 }
0x1a5c   :  { %v1203_v20 = vpop.f32.mrb[24].mxu1 }
0x1a5d   :  { %v2137_v21 = vadd.f32 %v2555_v46, %v1203_v20  ;;  %v2060_v22 = vpop.f32.mrb[25].mxu1 }
0x1a5e   :  { %v1206_v2 = vpop.f32.mrb[26].mxu1 }
0x1a5f   :  { %v1822_v23 = vmul.f32 -1.442695, %v2137_v21  ;;  %v2061_v24 = vpop.f32.mrb[27].mxu1 }
0x1a61   :  { %2252 = vpow2.f32 %v1822_v23 }
0x1a6b   :  { %v2253_v37 = vpop.eup %2252 }
0x1a6c   :  { %v1213_v27 = vadd.f32 1.0, %v2253_v37 }
0x1a6e   :  { %2254 = vrcp.f32 %v1213_v27 }
0x1a78   :  { %v2255_v61 = vpop.eup %2254 }
0x1a79   :  { %v1216_v5 = vmul.f32 2.0, %v2255_v61  ;;  %v1218_v30 = vmul.f32 %v2255_v61, %v1115_v13 }
0x1a7b   :  { %v1823_v60 = vadd.f32 -1.0, %v1216_v5 }
0x1a7d   :  { %1220 = vrot.lane.b32.xlu0 %v1823_v60, %s2291_s3 }
0x1aef   :  { %v1221_v29 = vpop.permute.xlu0 %1220 }
0x1af0   :  { %v1223_v47 = vmul.f32 %v2255_v61, %v1221_v29 }
0x1af2   :  { %1225 = vrot.lane.b32.xlu1 %v1223_v47, %s2292_s19 }
0x1b64   :  { %v1226_v31 = vpop.permute.xlu1 %1225 }
0x1b65   :  { %v1228_v32 = vadd.f32 %v1226_v31, %v1218_v30 }
0x1b67   :  { %2256 = vtanh.f32 %v1228_v32 }
0x1b71   :  { %v2257_v34 = vpop.eup %2256 }
0x1b72   :  { %1231 = vrot.lane.b32.xlu0 %v2257_v34, %s2291_s3 }
0x1be4   :  { %v1232_v35 = vpop.permute.xlu0 %1231 }
0x1be5   :  { %v1234_v6 = vmul.f32 %v2255_v61, %v1232_v35 }
0x1be7   :  { %v1275_v33 = vpack.c.bf16 %v1234_v6, %v1234_v6 }
0x1be9   :  { %1277 = vrot.lane.b32.xlu1 %v1275_v33, %s2292_s19 }
0x1c5b   :  { %v1278_v11 = vpop.permute.xlu1 %1277 }
0x1c5c   :  { %2075 = vmatmul.mubr.msk.bf16.vlgmr.msra.gmra.mrb[28].mxu0 %vm170_vm2, %v1278_v11 }
0x1c5d   :  { %2095 = vmatpush3.bf16.msra.mxu0 %v2500_v36  ;;  %2098 = vmatprep.mubr.msk.bf16.mxu0 %vm2289_vm0, %v2288_v0 }
0x1c5e   :  { %2096 = vmatprep.subr.bf16.mxu0 %v2288_v0 }
0x1c61   :  { %2097 = vmatpush3.bf16.msra.mxu0 %v2510_v38 }
0x1c62   :  { %2102 = vmatprep.subr.bf16.mxu0 %v2288_v0 }
0x1c64   :  { %2099 = vmatmul.mubr.msk.bf16.vlgmr.msra.gmra.mrb[32].mxu0 %vm170_vm2, %v2570_v26 }
0x1c65   :  { %2103 = vmatpush3.bf16.msra.mxu0 %v2519_v39  ;;  %2106 = vmatprep.mubr.msk.bf16.mxu0 %vm2289_vm0, %v2288_v0 }
0x1c66   :  { %2104 = vmatprep.subr.bf16.mxu0 %v2288_v0 }
0x1c69   :  { %2105 = vmatpush3.bf16.msra.mxu0 %v2528_v40 }
0x1c6a   :  { %2126 = vmatprep.subr.bf16.mxu0 %v2288_v0 }
0x1d2f   :  { %v1316_v41 = vpop.f32.mrb[28].mxu0 }
0x1d30   :  { %v2138_v42 = vadd.f32 %v2555_v46, %v1316_v41  ;;  %v2076_v7 = vpop.f32.mrb[29].mxu0 }
0x1d31   :  { %v1319_v59 = vpop.f32.mrb[30].mxu0 }
0x1d32   :  { %v1826_v43 = vmul.f32 -1.442695, %v2138_v42  ;;  %v2077_v25 = vpop.f32.mrb[31].mxu0 }
0x1d34   :  { %2258 = vpow2.f32 %v1826_v43 }
0x1d3e   :  { %v2259_v26 = vpop.eup %2258 }
0x1d3f   :  { %v1326_v44 = vadd.f32 1.0, %v2259_v26 }
0x1d41   :  { %2260 = vrcp.f32 %v1326_v44 }
0x1d4b   :  { %v2261_v45 = vpop.eup %2260 }
0x1d4c   :  { %v1329_v48 = vmul.f32 2.0, %v2261_v45  ;;  %v1331_v51 = vmul.f32 %v2261_v45, %v1228_v32 }
0x1d4e   :  { %v1827_v49 = vadd.f32 -1.0, %v1329_v48 }
0x1d50   :  { %1333 = vrot.lane.b32.xlu0 %v1827_v49, %s2291_s3 }
0x1dc2   :  { %v1334_v50 = vpop.permute.xlu0 %1333 }
0x1dc3   :  { %v1336_v57 = vmul.f32 %v2261_v45, %v1334_v50 }
0x1dc5   :  { %1338 = vrot.lane.b32.xlu1 %v1336_v57, %s2292_s19 }
0x1e37   :  { %v1339_v52 = vpop.permute.xlu1 %1338 }
0x1e38   :  { %v1341_v53 = vadd.f32 %v1339_v52, %v1331_v51 }
0x1e3a   :  { %2262 = vtanh.f32 %v1341_v53 }
0x1e44   :  { %v2263_v54 = vpop.eup %2262 }
0x1e45   :  { %1344 = vrot.lane.b32.xlu0 %v2263_v54, %s2291_s3 }
0x1eb7   :  { %v1345_v55 = vpop.permute.xlu0 %1344 }
0x1eb8   :  { %v1347_v56 = vmul.f32 %v2261_v45, %v1345_v55 }
0x1eba   :  { %v1388_v62 = vpack.c.bf16 %v1347_v56, %v1347_v56 }
0x1ebc   :  { %1390 = vrot.lane.b32.xlu1 %v1388_v62, %s2292_s19 }
0x1f2e   :  { %v1391_v16 = vpop.permute.xlu1 %1390 }
0x1f2f   :  { %2091 = vmatmul.mubr.msk.bf16.vlgmr.msra.gmra.mrb[28].mxu1 %vm170_vm2, %v1391_v16 }
0x1f30   :  { %2111 = vmatpush3.bf16.msra.mxu1 %v2500_v36  ;;  %2114 = vmatprep.mubr.msk.bf16.mxu1 %vm2289_vm0, %v2288_v0 }
0x1f31   :  { %2112 = vmatprep.subr.bf16.mxu1 %v2288_v0 }
0x1f34   :  { %2113 = vmatpush3.bf16.msra.mxu1 %v2510_v38 }
0x1f35   :  { %2118 = vmatprep.subr.bf16.mxu1 %v2288_v0 }
0x2002   :  { %v1429_v63 = vpop.f32.mrb[28].mxu1 }
0x2003   :  { %v2139_v1 = vadd.f32 %v2555_v46, %v1429_v63  ;;  %v2092_v3 = vpop.f32.mrb[29].mxu1 }
0x2004   :  { %v1432_v4 = vpop.f32.mrb[30].mxu1 }
0x2005   :  { %v1830_v58 = vmul.f32 -1.442695, %v2139_v1  ;;  %v2093_v9 = vpop.f32.mrb[31].mxu1 }
0x2007   :  { %2264 = vpow2.f32 %v1830_v58 }
0x2011   :  { %v2265_v10 = vpop.eup %2264 }
0x2012   :  { %v1439_v12 = vadd.f32 1.0, %v2265_v10 }
0x2014   :  { %2266 = vrcp.f32 %v1439_v12 }
0x2015   :  { %2268 = vpow2.f32 %v1802_v18 }
0x201e   :  { %v2267_v36 = vpop.eup %2266 }
0x201f   :  { %v1442_v13 = vmul.f32 2.0, %v2267_v36  ;;  %v2269_v8 = vpop.eup %2268  ;;  %v1444_v20 = vmul.f32 %v2267_v36, %v1341_v53 }
0x2020   :  { %v729_v19 = vadd.f32 1.0, %v2269_v8 }
0x2021   :  { %v1831_v15 = vadd.f32 -1.0, %v1442_v13 }
0x2022   :  { %2270 = vrcp.f32 %v729_v19 }
0x2023   :  { %1446 = vrot.lane.b32.xlu0 %v1831_v15, %s2291_s3 }
0x202c   :  { %v2271_v2 = vpop.eup %2270 }
0x202d   :  { %v732_v23 = vmul.f32 2.0, %v2271_v2  ;;  %v734_v47 = vmul.f32 %v2271_v2, %v2563_v14 }
0x202f   :  { %v1803_v37 = vadd.f32 -1.0, %v732_v23 }
0x2095   :  { %v1447_v17 = vpop.permute.xlu0 %1446 }
0x2096   :  { %v1449_v38 = vmul.f32 %v2267_v36, %v1447_v17  ;;  %v2190_v17 = vld [vmem:[%s2731_s7] sm:$0xff]  }
0x2098   :  { %1451 = vrot.lane.b32.xlu1 %v1449_v38, %s2292_s19  ;;  %v2191_v38 = vld [vmem:[%s2731_s7 + $0x8] sm:$0xff]  }
0x210a   :  { %v1452_v21 = vpop.permute.xlu1 %1451 }
0x210b   :  { %v1454_v22 = vadd.f32 %v1452_v21, %v1444_v20 }
0x210d   :  { %2272 = vtanh.f32 %v1454_v22 }
0x2117   :  { %v2273_v24 = vpop.eup %2272 }
0x2118   :  { %1457 = vrot.lane.b32.xlu0 %v2273_v24, %s2291_s3 }
0x211c   :  { %736 = vrot.lane.b32.xlu0 %v1803_v37, %s2291_s3 }
0x218a   :  { %v1458_v27 = vpop.permute.xlu0 %1457 }
0x218b   :  { %v1460_v61 = vmul.f32 %v2267_v36, %v1458_v27 }
0x218d   :  { %v1501_v5 = vpack.c.bf16 %v1460_v61, %v1460_v61 }
0x218e   :  { %v737_v28 = vpop.permute.xlu0 %736 }
0x218f   :  { %v739_v60 = vmul.f32 %v2271_v2, %v737_v28  ;;  %1503 = vrot.lane.b32.xlu1 %v1501_v5, %s2292_s19 }
0x2191   :  { %741 = vrot.lane.b32.xlu0 %v739_v60, %s2292_s19 }
0x2201   :  { %v1504_v29 = vpop.permute.xlu1 %1503 }
0x2202   :  { %2107 = vmatmul.mubr.msk.bf16.vlgmr.msra.gmra.mrb[32].mxu0 %vm170_vm2, %v1504_v29 }
0x2203   :  { %v742_v30 = vpop.permute.xlu0 %741  ;;  %2130 = vmatprep.mubr.msk.bf16.mxu0 %vm2289_vm0, %v2288_v0  ;;  %2127 = vmatpush3.bf16.msra.mxu0 %v2190_v17 }
0x2204   :  { %v744_v31 = vadd.f32 %v742_v30, %v734_v47  ;;  %2128 = vmatprep.subr.bf16.mxu0 %v2288_v0 }
0x2206   :  { %2274 = vtanh.f32 %v744_v31 }
0x2207   :  { %2129 = vmatpush3.bf16.msra.mxu0 %v2191_v38 }
0x2210   :  { %v2275_v32 = vpop.eup %2274 }
0x2211   :  { %747 = vrot.lane.b32.xlu0 %v2275_v32, %s2291_s3 }
0x2283   :  { %v748_v34 = vpop.permute.xlu0 %747 }
0x2284   :  { %v750_v35 = vmul.f32 %v2271_v2, %v748_v34 }
0x2286   :  { %v1574_v6 = vpack.c.bf16 %v750_v35, %v750_v35 }
0x2288   :  { %1576 = vrot.lane.b32.xlu0 %v1574_v6, %s2292_s19 }
0x22d5   :  { %v1542_v33 = vpop.f32.mrb[32].mxu0 }
0x22d6   :  { %v2140_v11 = vadd.f32 %v2555_v46, %v1542_v33  ;;  %v2108_v41 = vpop.f32.mrb[33].mxu0 }
0x22d7   :  { %v1545_v42 = vpop.f32.mrb[34].mxu0 }
0x22d8   :  { %v1834_v14 = vmul.f32 -1.442695, %v2140_v11  ;;  %v2109_v7 = vpop.f32.mrb[35].mxu0 }
0x22da   :  { %2276 = vpow2.f32 %v1834_v14 }
0x22e4   :  { %v2277_v59 = vpop.eup %2276 }
0x22e5   :  { %v1552_v43 = vadd.f32 1.0, %v2277_v59 }
0x22e7   :  { %2278 = vrcp.f32 %v1552_v43 }
0x22f1   :  { %v2279_v25 = vpop.eup %2278 }
0x22f2   :  { %v1555_v26 = vmul.f32 2.0, %v2279_v25  ;;  %v1557_v50 = vmul.f32 %v2279_v25, %v1454_v22  ;;  %v1840_v22 = vld [vmem:[%s2732_s8] ss:$0 sm:$0xff] }
0x22f4   :  { %v1835_v44 = vadd.f32 -1.0, %v1555_v26 }
0x22f6   :  { %1559 = vrot.lane.b32.xlu1 %v1835_v44, %s2291_s3 }
0x22fa   :  { %v1577_v45 = vpop.permute.xlu0 %1576 }
0x22fb   :  { %2115 = vmatmul.mubr.msk.bf16.vlgmr.msra.gmra.mrb[32].mxu1 %vm170_vm2, %v1577_v45 }
0x22fc   :  { %2119 = vmatpush3.bf16.msra.mxu1 %v2519_v39  ;;  %2122 = vmatprep.mubr.msk.bf16.mxu1 %vm2289_vm0, %v2288_v0 }
0x22fd   :  { %2120 = vmatprep.subr.bf16.mxu1 %v2288_v0 }
0x2300   :  { %2121 = vmatpush3.bf16.msra.mxu1 %v2528_v40 }
0x2368   :  { %v1560_v48 = vpop.permute.xlu1 %1559 }
0x2369   :  { %v1562_v49 = vmul.f32 %v2279_v25, %v1560_v48 }
0x236b   :  { %1564 = vrot.lane.b32.xlu1 %v1562_v49, %s2292_s19 }
0x23dd   :  { %v1565_v57 = vpop.permute.xlu1 %1564 }
0x23de   :  { %v1567_v51 = vadd.f32 %v1565_v57, %v1557_v50 }
0x23e0   :  { %2280 = vtanh.f32 %v1567_v51 }
0x23ea   :  { %v2281_v52 = vpop.eup %2280 }
0x23eb   :  { %1570 = vrot.lane.b32.xlu1 %v2281_v52, %s2291_s3 }
0x245d   :  { %v1571_v53 = vpop.permute.xlu1 %1570 }
0x245e   :  { %v1573_v39 = vmul.f32 %v2279_v25, %v1571_v53 }
0x2460   :  { %v1621_v54 = vpack.c.bf16 %v1573_v39, %v1573_v39 }
0x2462   :  { %1623 = vrot.lane.b32.xlu1 %v1621_v54, %s2292_s19 }
0x24d4   :  { %v1624_v55 = vpop.permute.xlu1 %1623 }
0x24d5   :  { %2123 = vmatmul.mubr.msk.bf16.vlgmr.msra.gmra.mrb[32].mxu1 %vm170_vm2, %v1624_v55 }
0x25a8   :  { %v1662_v40 = vpop.f32.mrb[32].mxu1 }
0x25a9   :  { %v2141_v56 = vadd.f32 %v2555_v46, %v1662_v40  ;;  %v2124_v62 = vpop.f32.mrb[33].mxu1 }
0x25aa   :  { %v1665_v16 = vpop.f32.mrb[34].mxu1 }
0x25ab   :  { %v1838_v63 = vmul.f32 -1.442695, %v2141_v56  ;;  %v2125_v1 = vpop.f32.mrb[35].mxu1 }
0x25ad   :  { %2282 = vpow2.f32 %v1838_v63 }
0x25b7   :  { %v2283_v3 = vpop.eup %2282 }
0x25b8   :  { %v1672_v4 = vadd.f32 1.0, %v2283_v3 }
0x25ba   :  { %2284 = vrcp.f32 %v1672_v4 }
0x25c4   :  { %v2285_v58 = vpop.eup %2284 }
0x25c5   :  { %v1675_v9 = vmul.f32 2.0, %v2285_v58  ;;  %v1677_v13 = vmul.f32 %v2285_v58, %v1567_v51 }
0x25c7   :  { %v1839_v10 = vadd.f32 -1.0, %v1675_v9 }
0x25c9   :  { %1679 = vrot.lane.b32.xlu0 %v1839_v10, %s2291_s3 }
0x263b   :  { %v1680_v12 = vpop.permute.xlu0 %1679 }
0x263c   :  { %v1682_v36 = vmul.f32 %v2285_v58, %v1680_v12 }
0x263e   :  { %1684 = vrot.lane.b32.xlu1 %v1682_v36, %s2292_s19 }
0x26b0   :  { %v1685_v15 = vpop.permute.xlu1 %1684 }
0x26b1   :  { %v1687_v46 = vadd.f32 %v1685_v15, %v1677_v13 }
0x26b3   :  { %2286 = vtanh.f32 %v1687_v46 }
0x26bd   :  { %v2287_v18 = vpop.eup %2286 }
0x26be   :  { %1690 = vrot.lane.b32.xlu0 %v2287_v18, %s2291_s3 }
0x2730   :  { %v1691_v8 = vpop.permute.xlu0 %1690 }
0x2731   :  { %v1693_v19 = vmul.f32 %v2285_v58, %v1691_v8 }
0x2733   :  { %v1694_v20 = vpack.c.bf16 %v1693_v19, %v1693_v19 }
0x2735   :  { %1707 = vrot.lane.b32.xlu1 %v1694_v20, %s2292_s19 }
0x27a7   :  { %v1708_v21 = vpop.permute.xlu1 %1707 }
0x27a8   :  { %2131 = vmatmul.mubr.msk.bf16.vlgmr.msra.gmra.mrb[36].mxu0 %vm170_vm2, %v1708_v21 }
0x287b   :  { %v1758_v2 = vpop.f32.mrb[36].mxu0 }
0x287c   :  { %v1759_v23 = vadd.f32 %v1840_v22, %v1758_v2  ;;  %v2132_v24 = vpop.f32.mrb[37].mxu0 }
0x287d   :  { %v1761_v0 = vpop.f32.mrb[38].mxu0 }
0x287e   :  { %1764 = vst [vmem:[%s2733_s9] sm:$0xff] %v1759_v23  ;;  %v2133_v37 = vpop.f32.mrb[39].mxu0 }

</bundles_post_ra>
